<compile_context>
chip_gen: v7x
topology: tpu7x:2x2x1
jax: 0.10.0
libtpu: 0.0.40
codegen_flags: <defaults>
</compile_context>

<pallas_src>
import functools

import jax
import jax.numpy as jnp
from jax import lax
from jax.experimental import pallas as pl
from jax.experimental.pallas import tpu as pltpu


def _round_up(x, m):
    return ((x + m - 1) // m) * m


def _vmem_specs(n):
    return [pl.BlockSpec(memory_space=pltpu.MemorySpace.VMEM) for _ in range(n)]


# ------------------------------ fused kernel --------------------------------

def _fused_kernel(*refs, B, Wg, Hp2, Wp2, C1, C2, N1p, N1alloc, Nim, train):
    """conv1+pool1 -> conv2+pool2 -> fc1 -> fc2 -> cls (+pro/normalize), in VMEM."""
    if train:
        (p_ref, w1_ref, b1_ref, w2_ref, b2_ref,
         f1w_ref, f1b_ref, f2w_ref, f2b_ref, cw_ref, cb_ref, pw_ref, pb_ref,
         cls_ref, proj_ref,
         pool1_ref, im_ref, conv2_ref) = refs
    else:
        (p_ref, w1_ref, b1_ref, w2_ref, b2_ref,
         f1w_ref, f1b_ref, f2w_ref, f2b_ref, cw_ref, cb_ref,
         cls_ref,
         pool1_ref, im_ref, conv2_ref) = refs
        pw_ref = pb_ref = proj_ref = None

    f32, bf16 = jnp.float32, jnp.bfloat16

    # ---- conv1 (3x3 valid) + bias + ReLU + 2x2 max-pool -------------------
    # p_ref stacks the stride-2 im2col of x at the 4 pool offsets along M
    # (rows in (h1, w1_pad, b) order); ONE matmul, then a group max
    # (ReLU/bias are monotone, so max commutes with them).
    y1 = jnp.dot(p_ref[...], w1_ref[...], preferred_element_type=f32)   # (4*N1p, C1)
    m1 = jnp.maximum(jnp.maximum(y1[0 * N1p:1 * N1p], y1[1 * N1p:2 * N1p]),
                     jnp.maximum(y1[2 * N1p:3 * N1p], y1[3 * N1p:4 * N1p]))
    pool1_ref[0:N1p, :] = jnp.maximum(m1 + b1_ref[...], 0.0).astype(bf16)
    if N1alloc > N1p:   # zero tail so shifted slices below never read garbage
        pool1_ref[N1p:N1alloc, :] = jnp.zeros((N1alloc - N1p, C1), bf16)

    # ---- conv2: in-VMEM im2col (9 bulk shifted-slice copies) + ONE matmul --
    # Row r of the im2col grid is pool1 position ((h2*Wg + w2)*B + b); taps are
    # uniform shifts of that index.  Rows whose (h2, w2) fall in the padding
    # region are junk but finite and are never read by pool2.
    for t in range(9):
        ki, kj = divmod(t, 3)
        shift = (ki * Wg + kj) * B
        im_ref[:, t * C1:(t + 1) * C1] = pool1_ref[shift:shift + Nim, :]
    c2 = jnp.dot(im_ref[...], w2_ref[...], preferred_element_type=f32)   # (Nim, C2)
    conv2_ref[...] = jnp.maximum(c2 + b2_ref[...], 0.0).astype(bf16)

    # ---- 2x2 max-pool + fc1 (ONE matmul; NCHW flatten folded into fc1_w) ---
    slabs = []
    for i2 in range(Hp2):
        for j2 in range(Wp2):
            m = None
            for di in range(2):
                for dj in range(2):
                    start = ((2 * i2 + di) * Wg + (2 * j2 + dj)) * B
                    v = conv2_ref[start:start + B, :]        # contiguous (B, C2)
                    m = v if m is None else jnp.maximum(m, v)
            slabs.append(m)
    pooled = jnp.concatenate(slabs, axis=1) if len(slabs) > 1 else slabs[0]  # (B, flat) bf16

    h1 = jnp.maximum(jnp.dot(pooled, f1w_ref[...], preferred_element_type=f32)
                     + f1b_ref[...], 0.0)
    h2 = jnp.maximum(jnp.dot(h1.astype(bf16), f2w_ref[...], preferred_element_type=f32)
                     + f2b_ref[...], 0.0)
    h2b = h2.astype(bf16)

    cls_ref[...] = jnp.dot(h2b, cw_ref[...], preferred_element_type=f32) + cb_ref[...]
    if train:
        p = jnp.dot(h2b, pw_ref[...], preferred_element_type=f32) + pb_ref[...]
        ss = jnp.sum(p * p, axis=-1, keepdims=True)
        # F.normalize(p, dim=1, eps=1e-12); padded cols are exactly zero.
        proj_ref[...] = p * lax.rsqrt(jnp.maximum(ss, 1e-24))


# ------------------------------ host-side glue -------------------------------

def _conv1_pool_patches(x_nhwc, Wg):
    """Stride-2 im2col of the raw input at the 4 MaxPool2d(2) offsets.

    Rows in (h1, w1 padded to Wg, b) order; the 4 offsets are stacked along M.
    Returns (4 * Hp1*Wg*B, 9*Cin) in bf16 (the only plain-JAX rearrangement)."""
    B, H, W, C = x_nhwc.shape
    Hp, Wp = (H - 2) // 2, (W - 2) // 2
    groups = []
    for di in range(2):
        for dj in range(2):
            taps = []
            for ki in range(3):
                for kj in range(3):
                    h0, w0 = di + ki, dj + kj
                    taps.append(x_nhwc[:, h0:h0 + 2 * Hp:2, w0:w0 + 2 * Wp:2, :])
            g = jnp.concatenate(taps, axis=-1)          # (B, Hp, Wp, 9C)
            g = jnp.transpose(g, (1, 2, 0, 3))          # (Hp, Wp, B, 9C)
            g = jnp.pad(g, ((0, 0), (0, Wg - Wp), (0, 0), (0, 0)))
            groups.append(g.reshape(Hp * Wg * B, 9 * C))
    return jnp.concatenate(groups, axis=0).astype(jnp.bfloat16)


@functools.partial(jax.jit, static_argnames=("mode", "num_classes", "outchannel"))
def _forward(kp, x_nchw, mode, num_classes, outchannel):
    B, _, P, _ = x_nchw.shape
    x = jnp.transpose(x_nchw, (0, 2, 3, 1)).astype(jnp.float32)   # NCHW -> NHWC

    C1 = kp["w1"].shape[1]
    C2 = kp["w2"].shape[1]
    Hp1 = Wp1 = (P - 2) // 2            # pool1 spatial
    Ho2 = Wo2 = Hp1 - 2                 # conv2 spatial
    Hp2 = Wp2 = Ho2 // 2                # pool2 spatial
    assert Hp2 >= 1 and Ho2 >= 2 * Hp2 and Wo2 >= 2 * Wp2
    Wg = _round_up(Wp1, 8)              # padded per-row stride (8-aligned slabs)
    N1p = Hp1 * Wg * B                  # pool1 rows (full padded grid), mult of 8
    Nim = _round_up(((2 * Hp2 - 1) * Wg + 2 * Wp2) * B, 8)      # grid rows pool2 needs
    N1alloc = _round_up(max(N1p, (2 * Wg + 2) * B + Nim), 8)    # keeps shifted reads in-bounds
    assert (2 * Wg + 2) * B + Nim <= N1alloc
    flat = Hp2 * Wp2 * C2
    assert kp["fc1_w"].shape[0] == flat

    patches = _conv1_pool_patches(x, Wg)                         # (4*N1p, 9*Cin) bf16

    kern = functools.partial(
        _fused_kernel, B=B, Wg=Wg, Hp2=Hp2, Wp2=Wp2, C1=C1, C2=C2,
        N1p=N1p, N1alloc=N1alloc, Nim=Nim, train=(mode == "train"))
    scratch = [pltpu.VMEM((N1alloc, C1), jnp.bfloat16),          # pooled1 (bf16, padded rows)
               pltpu.VMEM((Nim, 9 * C1), jnp.bfloat16),          # conv2 im2col
               pltpu.VMEM((Nim, C2), jnp.bfloat16)]              # conv2 activation
    cparams = pltpu.CompilerParams(vmem_limit_bytes=32 * 1024 * 1024)

    common = (patches, kp["w1"], kp["b1"], kp["w2"], kp["b2"],
              kp["fc1_w"], kp["fc1_b"], kp["fc2_w"], kp["fc2_b"],
              kp["cls_w"], kp["cls_b"])
    ncp = kp["cls_w"].shape[1]

    if mode == "test":
        cls_pad = pl.pallas_call(
            kern,
            out_shape=jax.ShapeDtypeStruct((B, ncp), jnp.float32),
            in_specs=_vmem_specs(len(common)),
            out_specs=pl.BlockSpec(memory_space=pltpu.MemorySpace.VMEM),
            scratch_shapes=scratch,
            compiler_params=cparams,
        )(*common)
        return cls_pad[:, :num_classes]

    ocp = kp["pro_w"].shape[1]
    ins = common + (kp["pro_w"], kp["pro_b"])
    cls_pad, proj_pad = pl.pallas_call(
        kern,
        out_shape=(jax.ShapeDtypeStruct((B, ncp), jnp.float32),
                   jax.ShapeDtypeStruct((B, ocp), jnp.float32)),
        in_specs=_vmem_specs(len(ins)),
        out_specs=(pl.BlockSpec(memory_space=pltpu.MemorySpace.VMEM),
                   pl.BlockSpec(memory_space=pltpu.MemorySpace.VMEM)),
        scratch_shapes=scratch,
        compiler_params=cparams,
    )(*ins)
    return cls_pad[:, :num_classes], proj_pad[:, :outchannel]


def discriminator_forward(prepped, x_nchw, mode="test"):
    kp, num_classes, outchannel = prepped
    if mode not in ("test", "train"):
        raise ValueError(f"unknown mode {mode!r}")
    return _forward(kp, x_nchw, mode=mode,
                    num_classes=num_classes, outchannel=outchannel)


# ------------------------------ parameter prep -------------------------------

def prepare_params(params):
    """One-time conversion to the fused-kernel layout: conv weights as matmul
    matrices (bf16, conv2 taps concatenated along K), torch's NCHW flatten
    folded into fc1_w's row order, heads zero-padded to lane-dense widths."""
    f32, bf16 = jnp.float32, jnp.bfloat16
    k, _, cin, C1 = params["conv1_w"].shape
    C2 = params["conv2_w"].shape[3]
    flat, dim = params["fc1_w"].shape
    nc = params["cls_w"].shape[1]
    oc = params["pro_w"].shape[1]
    hw2 = flat // C2                                     # Hp2 * Wp2

    # Kernel flatten order is (h, w, c); torch's out2.view(B,-1) is (c, h, w).
    o = jnp.arange(flat)
    perm = (o % C2) * hw2 + o // C2
    fc1_w = params["fc1_w"][perm, :]

    ncp = _round_up(nc, 128)                             # lane-dense head widths
    ocp = _round_up(oc, 128)
    cls_w = jnp.zeros((dim, ncp), f32).at[:, :nc].set(params["cls_w"])
    cls_b = jnp.zeros((ncp,), f32).at[:nc].set(params["cls_b"])
    pro_w = jnp.zeros((dim, ocp), f32).at[:, :oc].set(params["pro_w"])
    pro_b = jnp.zeros((ocp,), f32).at[:oc].set(params["pro_b"])

    kp = {
        "w1": params["conv1_w"].reshape(k * k * cin, C1).astype(bf16),
        "b1": params["conv1_b"].reshape(1, C1).astype(f32),
        "w2": params["conv2_w"].reshape(k * k * C1, C2).astype(bf16),   # fused-K (576, C2)
        "b2": params["conv2_b"].reshape(1, C2).astype(f32),
        "fc1_w": fc1_w.astype(bf16),
        "fc1_b": params["fc1_b"].reshape(1, dim).astype(f32),
        "fc2_w": params["fc2_w"].astype(bf16),
        "fc2_b": params["fc2_b"].reshape(1, dim).astype(f32),
        "cls_w": cls_w.astype(bf16),
        "cls_b": cls_b.reshape(1, ncp),
        "pro_w": pro_w.astype(bf16),
        "pro_b": pro_b.reshape(1, ocp),
    }
    return kp, nc, oc


def final_flattened_size(inchannel, patch_size):
    # Mirrors discriminator._get_final_flattened_size()
    h1 = patch_size - 2            # conv1 (k=3, valid)
    h1p = h1 // 2                  # maxpool 2
    h2 = h1p - 2                   # conv2 (k=3, valid)
    h2p = h2 // 2                  # maxpool 2
    return 128 * h2p * h2p


def init_params(key, inchannel, outchannel, num_classes, patch_size, dim=512):
    flat = final_flattened_size(inchannel, patch_size)
    ks = jax.random.split(key, 12)

    def w(k, shape, fan_in):
        return jax.random.normal(k, shape, jnp.float32) / jnp.sqrt(float(fan_in))

    # NOTE: self.mlp is defined in __init__ but never used in forward -> omitted.
    return {
        "conv1_w": w(ks[0], (3, 3, inchannel, 64), 9 * inchannel),
        "conv1_b": w(ks[1], (64,), 9 * inchannel),
        "conv2_w": w(ks[2], (3, 3, 64, 128), 9 * 64),
        "conv2_b": w(ks[3], (128,), 9 * 64),
        "fc1_w": w(ks[4], (flat, dim), flat),
        "fc1_b": w(ks[5], (dim,), flat),
        "fc2_w": w(ks[6], (dim, dim), dim),
        "fc2_b": w(ks[7], (dim,), dim),
        "cls_w": w(ks[8], (dim, num_classes), dim),
        "cls_b": w(ks[9], (num_classes,), dim),
        "pro_w": w(ks[10], (dim, outchannel), dim),
        "pro_b": w(ks[11], (outchannel,), dim),
    }


# ----------------------------------- main ------------------------------------

if __name__ == "__main__":
    B, inchannel, outchannel, num_classes, patch_size = 2, 4, 64, 7, 16

    key = jax.random.PRNGKey(0)
    pkey, xkey = jax.random.split(key)
    params = init_params(pkey, inchannel, outchannel, num_classes, patch_size)
    prepped = prepare_params(params)      # one-time: permute/pad/cast weights
    x = jax.random.normal(xkey, (B, inchannel, patch_size, patch_size), jnp.float32)

    # test mode: clss only
    clss = discriminator_forward(prepped, x, mode="test")
    jax.block_until_ready(clss)
    assert clss.shape == (B, num_classes)
    assert bool(jnp.all(jnp.isfinite(clss)))

    # train mode: (clss, normalized projection)
    clss_tr, proj = discriminator_forward(prepped, x, mode="train")
    jax.block_until_ready((clss_tr, proj))
    assert clss_tr.shape == (B, num_classes)
    assert proj.shape == (B, outchannel)
    assert bool(jnp.all(jnp.isfinite(proj)))

    print("KERNEL_OK")
</pallas_src>

<mosaic_0001>
module attributes {stable_mosaic.version = 11 : i64} {
  func.func @_fused_kernel(%arg0: memref<448x36xbf16, #tpu.memory_space<vmem>>, %arg1: memref<36x64xbf16, #tpu.memory_space<vmem>>, %arg2: memref<1x64xf32, #tpu.memory_space<vmem>>, %arg3: memref<576x128xbf16, #tpu.memory_space<vmem>>, %arg4: memref<1x128xf32, #tpu.memory_space<vmem>>, %arg5: memref<512x512xbf16, #tpu.memory_space<vmem>>, %arg6: memref<1x512xf32, #tpu.memory_space<vmem>>, %arg7: memref<512x512xbf16, #tpu.memory_space<vmem>>, %arg8: memref<1x512xf32, #tpu.memory_space<vmem>>, %arg9: memref<512x128xbf16, #tpu.memory_space<vmem>>, %arg10: memref<1x128xf32, #tpu.memory_space<vmem>>, %arg11: memref<2x128xf32, #tpu.memory_space<vmem>>, %arg12: memref<112x64xbf16, #tpu.memory_space<vmem>>, %arg13: memref<56x576xbf16, #tpu.memory_space<vmem>>, %arg14: memref<56x128xbf16, #tpu.memory_space<vmem>>) attributes {dimension_semantics = [], scalar_prefetch = 0 : i64, scratch_operands = 3 : i64, tpu.core_type = #tpu.core_type<tc>} {
    %c0 = arith.constant 0 : index
    %c0_0 = arith.constant 0 : index
    %0 = vector.load %arg0[%c0, %c0_0] : memref<448x36xbf16, #tpu.memory_space<vmem>>, vector<448x36xbf16>
    %c0_1 = arith.constant 0 : index
    %c0_2 = arith.constant 0 : index
    %1 = vector.load %arg1[%c0_1, %c0_2] : memref<36x64xbf16, #tpu.memory_space<vmem>>, vector<36x64xbf16>
    %cst = arith.constant dense<0.000000e+00> : vector<448x64xf32>
    %2 = tpu.matmul %0, %1, %cst {dimension_numbers = #tpu.dot_dimension_numbers<[1], [0], [0], [1], [0, 0, 1, 1], [], []>} : vector<448x36xbf16>, vector<36x64xbf16>, vector<448x64xf32> -> vector<448x64xf32>
    %3 = vector.extract_strided_slice %2 {offsets = [0, 0], sizes = [112, 64], strides = [1, 1]} : vector<448x64xf32> to vector<112x64xf32>
    %4 = vector.extract_strided_slice %2 {offsets = [112, 0], sizes = [112, 64], strides = [1, 1]} : vector<448x64xf32> to vector<112x64xf32>
    %5 = arith.maximumf %3, %4 : vector<112x64xf32>
    %6 = vector.extract_strided_slice %2 {offsets = [224, 0], sizes = [112, 64], strides = [1, 1]} : vector<448x64xf32> to vector<112x64xf32>
    %7 = vector.extract_strided_slice %2 {offsets = [336, 0], sizes = [112, 64], strides = [1, 1]} : vector<448x64xf32> to vector<112x64xf32>
    %8 = arith.maximumf %6, %7 : vector<112x64xf32>
    %9 = arith.maximumf %5, %8 : vector<112x64xf32>
    %c0_3 = arith.constant 0 : index
    %c0_4 = arith.constant 0 : index
    %10 = vector.load %arg2[%c0_3, %c0_4] : memref<1x64xf32, #tpu.memory_space<vmem>>, vector<1x64xf32>
    %11 = vector.broadcast %10 : vector<1x64xf32> to vector<112x64xf32>
    %12 = arith.addf %9, %11 : vector<112x64xf32>
    %cst_5 = arith.constant 0.000000e+00 : f32
    %13 = vector.broadcast %cst_5 : f32 to vector<112x64xf32>
    %14 = arith.maximumf %12, %13 : vector<112x64xf32>
    %15 = arith.truncf %14 : vector<112x64xf32> to vector<112x64xbf16>
    %c0_6 = arith.constant 0 : index
    %c0_7 = arith.constant 0 : index
    %16 = vector.load %arg12[%c0_6, %c0_7] : memref<112x64xbf16, #tpu.memory_space<vmem>>, vector<112x64xbf16>
    tpu.vector_store %arg12[%c0_6, %c0_7], %15 {strides = array<i32>} : memref<112x64xbf16, #tpu.memory_space<vmem>>, vector<112x64xbf16>,
    %c0_8 = arith.constant 0 : index
    %c0_9 = arith.constant 0 : index
    %17 = vector.load %arg12[%c0_8, %c0_9] : memref<112x64xbf16, #tpu.memory_space<vmem>>, vector<56x64xbf16>
    %c0_10 = arith.constant 0 : index
    %c0_11 = arith.constant 0 : index
    %18 = vector.load %arg13[%c0_10, %c0_11] : memref<56x576xbf16, #tpu.memory_space<vmem>>, vector<56x64xbf16>
    tpu.vector_store %arg13[%c0_10, %c0_11], %17 {strides = array<i32>} : memref<56x576xbf16, #tpu.memory_space<vmem>>, vector<56x64xbf16>,
    %c2 = arith.constant 2 : index
    %c0_12 = arith.constant 0 : index
    %19 = vector.load %arg12[%c2, %c0_12] : memref<112x64xbf16, #tpu.memory_space<vmem>>, vector<56x64xbf16>
    %c0_13 = arith.constant 0 : index
    %c64 = arith.constant 64 : index
    %20 = vector.load %arg13[%c0_13, %c64] : memref<56x576xbf16, #tpu.memory_space<vmem>>, vector<56x64xbf16>
    tpu.vector_store %arg13[%c0_13, %c64], %19 {strides = array<i32>} : memref<56x576xbf16, #tpu.memory_space<vmem>>, vector<56x64xbf16>,
    %c4 = arith.constant 4 : index
    %c0_14 = arith.constant 0 : index
    %21 = vector.load %arg12[%c4, %c0_14] : memref<112x64xbf16, #tpu.memory_space<vmem>>, vector<56x64xbf16>
    %c0_15 = arith.constant 0 : index
    %c128 = arith.constant 128 : index
    %22 = vector.load %arg13[%c0_15, %c128] : memref<56x576xbf16, #tpu.memory_space<vmem>>, vector<56x64xbf16>
    tpu.vector_store %arg13[%c0_15, %c128], %21 {strides = array<i32>} : memref<56x576xbf16, #tpu.memory_space<vmem>>, vector<56x64xbf16>,
    %c16 = arith.constant 16 : index
    %c0_16 = arith.constant 0 : index
    %23 = vector.load %arg12[%c16, %c0_16] : memref<112x64xbf16, #tpu.memory_space<vmem>>, vector<56x64xbf16>
    %c0_17 = arith.constant 0 : index
    %c192 = arith.constant 192 : index
    %24 = vector.load %arg13[%c0_17, %c192] : memref<56x576xbf16, #tpu.memory_space<vmem>>, vector<56x64xbf16>
    tpu.vector_store %arg13[%c0_17, %c192], %23 {strides = array<i32>} : memref<56x576xbf16, #tpu.memory_space<vmem>>, vector<56x64xbf16>,
    %c18 = arith.constant 18 : index
    %c0_18 = arith.constant 0 : index
    %25 = vector.load %arg12[%c18, %c0_18] : memref<112x64xbf16, #tpu.memory_space<vmem>>, vector<56x64xbf16>
    %c0_19 = arith.constant 0 : index
    %c256 = arith.constant 256 : index
    %26 = vector.load %arg13[%c0_19, %c256] : memref<56x576xbf16, #tpu.memory_space<vmem>>, vector<56x64xbf16>
    tpu.vector_store %arg13[%c0_19, %c256], %25 {strides = array<i32>} : memref<56x576xbf16, #tpu.memory_space<vmem>>, vector<56x64xbf16>,
    %c20 = arith.constant 20 : index
    %c0_20 = arith.constant 0 : index
    %27 = vector.load %arg12[%c20, %c0_20] : memref<112x64xbf16, #tpu.memory_space<vmem>>, vector<56x64xbf16>
    %c0_21 = arith.constant 0 : index
    %c320 = arith.constant 320 : index
    %28 = vector.load %arg13[%c0_21, %c320] : memref<56x576xbf16, #tpu.memory_space<vmem>>, vector<56x64xbf16>
    tpu.vector_store %arg13[%c0_21, %c320], %27 {strides = array<i32>} : memref<56x576xbf16, #tpu.memory_space<vmem>>, vector<56x64xbf16>,
    %c32 = arith.constant 32 : index
    %c0_22 = arith.constant 0 : index
    %29 = vector.load %arg12[%c32, %c0_22] : memref<112x64xbf16, #tpu.memory_space<vmem>>, vector<56x64xbf16>
    %c0_23 = arith.constant 0 : index
    %c384 = arith.constant 384 : index
    %30 = vector.load %arg13[%c0_23, %c384] : memref<56x576xbf16, #tpu.memory_space<vmem>>, vector<56x64xbf16>
    tpu.vector_store %arg13[%c0_23, %c384], %29 {strides = array<i32>} : memref<56x576xbf16, #tpu.memory_space<vmem>>, vector<56x64xbf16>,
    %c34 = arith.constant 34 : index
    %c0_24 = arith.constant 0 : index
    %31 = vector.load %arg12[%c34, %c0_24] : memref<112x64xbf16, #tpu.memory_space<vmem>>, vector<56x64xbf16>
    %c0_25 = arith.constant 0 : index
    %c448 = arith.constant 448 : index
    %32 = vector.load %arg13[%c0_25, %c448] : memref<56x576xbf16, #tpu.memory_space<vmem>>, vector<56x64xbf16>
    tpu.vector_store %arg13[%c0_25, %c448], %31 {strides = array<i32>} : memref<56x576xbf16, #tpu.memory_space<vmem>>, vector<56x64xbf16>,
    %c36 = arith.constant 36 : index
    %c0_26 = arith.constant 0 : index
    %33 = vector.load %arg12[%c36, %c0_26] : memref<112x64xbf16, #tpu.memory_space<vmem>>, vector<56x64xbf16>
    %c0_27 = arith.constant 0 : index
    %c512 = arith.constant 512 : index
    %34 = vector.load %arg13[%c0_27, %c512] : memref<56x576xbf16, #tpu.memory_space<vmem>>, vector<56x64xbf16>
    tpu.vector_store %arg13[%c0_27, %c512], %33 {strides = array<i32>} : memref<56x576xbf16, #tpu.memory_space<vmem>>, vector<56x64xbf16>,
    %c0_28 = arith.constant 0 : index
    %c0_29 = arith.constant 0 : index
    %35 = vector.load %arg13[%c0_28, %c0_29] : memref<56x576xbf16, #tpu.memory_space<vmem>>, vector<56x576xbf16>
    %c0_30 = arith.constant 0 : index
    %c0_31 = arith.constant 0 : index
    %36 = vector.load %arg3[%c0_30, %c0_31] : memref<576x128xbf16, #tpu.memory_space<vmem>>, vector<576x128xbf16>
    %cst_32 = arith.constant dense<0.000000e+00> : vector<56x128xf32>
    %37 = tpu.matmul %35, %36, %cst_32 {dimension_numbers = #tpu.dot_dimension_numbers<[1], [0], [0], [1], [0, 0, 1, 1], [], []>} : vector<56x576xbf16>, vector<576x128xbf16>, vector<56x128xf32> -> vector<56x128xf32>
    %c0_33 = arith.constant 0 : index
    %c0_34 = arith.constant 0 : index
    %38 = vector.load %arg4[%c0_33, %c0_34] : memref<1x128xf32, #tpu.memory_space<vmem>>, vector<1x128xf32>
    %39 = vector.broadcast %38 : vector<1x128xf32> to vector<56x128xf32>
    %40 = arith.addf %37, %39 : vector<56x128xf32>
    %cst_35 = arith.constant 0.000000e+00 : f32
    %41 = vector.broadcast %cst_35 : f32 to vector<56x128xf32>
    %42 = arith.maximumf %40, %41 : vector<56x128xf32>
    %43 = arith.truncf %42 : vector<56x128xf32> to vector<56x128xbf16>
    %c0_36 = arith.constant 0 : index
    %c0_37 = arith.constant 0 : index
    %44 = vector.load %arg14[%c0_36, %c0_37] : memref<56x128xbf16, #tpu.memory_space<vmem>>, vector<56x128xbf16>
    tpu.vector_store %arg14[%c0_36, %c0_37], %43 {strides = array<i32>} : memref<56x128xbf16, #tpu.memory_space<vmem>>, vector<56x128xbf16>,
    %c0_38 = arith.constant 0 : index
    %c0_39 = arith.constant 0 : index
    %45 = vector.load %arg14[%c0_38, %c0_39] : memref<56x128xbf16, #tpu.memory_space<vmem>>, vector<2x128xbf16>
    %c2_40 = arith.constant 2 : index
    %c0_41 = arith.constant 0 : index
    %46 = vector.load %arg14[%c2_40, %c0_41] : memref<56x128xbf16, #tpu.memory_space<vmem>>, vector<2x128xbf16>
    %47 = arith.maximumf %45, %46 : vector<2x128xbf16>
    %c16_42 = arith.constant 16 : index
    %c0_43 = arith.constant 0 : index
    %48 = vector.load %arg14[%c16_42, %c0_43] : memref<56x128xbf16, #tpu.memory_space<vmem>>, vector<2x128xbf16>
    %49 = arith.maximumf %47, %48 : vector<2x128xbf16>
    %c18_44 = arith.constant 18 : index
    %c0_45 = arith.constant 0 : index
    %50 = vector.load %arg14[%c18_44, %c0_45] : memref<56x128xbf16, #tpu.memory_space<vmem>>, vector<2x128xbf16>
    %51 = arith.maximumf %49, %50 : vector<2x128xbf16>
    %c4_46 = arith.constant 4 : index
    %c0_47 = arith.constant 0 : index
    %52 = vector.load %arg14[%c4_46, %c0_47] : memref<56x128xbf16, #tpu.memory_space<vmem>>, vector<2x128xbf16>
    %c6 = arith.constant 6 : index
    %c0_48 = arith.constant 0 : index
    %53 = vector.load %arg14[%c6, %c0_48] : memref<56x128xbf16, #tpu.memory_space<vmem>>, vector<2x128xbf16>
    %54 = arith.maximumf %52, %53 : vector<2x128xbf16>
    %c20_49 = arith.constant 20 : index
    %c0_50 = arith.constant 0 : index
    %55 = vector.load %arg14[%c20_49, %c0_50] : memref<56x128xbf16, #tpu.memory_space<vmem>>, vector<2x128xbf16>
    %56 = arith.maximumf %54, %55 : vector<2x128xbf16>
    %c22 = arith.constant 22 : index
    %c0_51 = arith.constant 0 : index
    %57 = vector.load %arg14[%c22, %c0_51] : memref<56x128xbf16, #tpu.memory_space<vmem>>, vector<2x128xbf16>
    %58 = arith.maximumf %56, %57 : vector<2x128xbf16>
    %c32_52 = arith.constant 32 : index
    %c0_53 = arith.constant 0 : index
    %59 = vector.load %arg14[%c32_52, %c0_53] : memref<56x128xbf16, #tpu.memory_space<vmem>>, vector<2x128xbf16>
    %c34_54 = arith.constant 34 : index
    %c0_55 = arith.constant 0 : index
    %60 = vector.load %arg14[%c34_54, %c0_55] : memref<56x128xbf16, #tpu.memory_space<vmem>>, vector<2x128xbf16>
    %61 = arith.maximumf %59, %60 : vector<2x128xbf16>
    %c48 = arith.constant 48 : index
    %c0_56 = arith.constant 0 : index
    %62 = vector.load %arg14[%c48, %c0_56] : memref<56x128xbf16, #tpu.memory_space<vmem>>, vector<2x128xbf16>
    %63 = arith.maximumf %61, %62 : vector<2x128xbf16>
    %c50 = arith.constant 50 : index
    %c0_57 = arith.constant 0 : index
    %64 = vector.load %arg14[%c50, %c0_57] : memref<56x128xbf16, #tpu.memory_space<vmem>>, vector<2x128xbf16>
    %65 = arith.maximumf %63, %64 : vector<2x128xbf16>
    %c36_58 = arith.constant 36 : index
    %c0_59 = arith.constant 0 : index
    %66 = vector.load %arg14[%c36_58, %c0_59] : memref<56x128xbf16, #tpu.memory_space<vmem>>, vector<2x128xbf16>
    %c38 = arith.constant 38 : index
    %c0_60 = arith.constant 0 : index
    %67 = vector.load %arg14[%c38, %c0_60] : memref<56x128xbf16, #tpu.memory_space<vmem>>, vector<2x128xbf16>
    %68 = arith.maximumf %66, %67 : vector<2x128xbf16>
    %c52 = arith.constant 52 : index
    %c0_61 = arith.constant 0 : index
    %69 = vector.load %arg14[%c52, %c0_61] : memref<56x128xbf16, #tpu.memory_space<vmem>>, vector<2x128xbf16>
    %70 = arith.maximumf %68, %69 : vector<2x128xbf16>
    %c54 = arith.constant 54 : index
    %c0_62 = arith.constant 0 : index
    %71 = vector.load %arg14[%c54, %c0_62] : memref<56x128xbf16, #tpu.memory_space<vmem>>, vector<2x128xbf16>
    %72 = arith.maximumf %70, %71 : vector<2x128xbf16>
    %73 = tpu.concatenate %51, %58, %65, %72 in 1 : vector<2x128xbf16>, vector<2x128xbf16>, vector<2x128xbf16>, vector<2x128xbf16> -> vector<2x512xbf16>
    %c0_63 = arith.constant 0 : index
    %c0_64 = arith.constant 0 : index
    %74 = vector.load %arg5[%c0_63, %c0_64] : memref<512x512xbf16, #tpu.memory_space<vmem>>, vector<512x512xbf16>
    %cst_65 = arith.constant dense<0.000000e+00> : vector<2x512xf32>
    %75 = tpu.matmul %73, %74, %cst_65 {dimension_numbers = #tpu.dot_dimension_numbers<[1], [0], [0], [1], [0, 0, 1, 1], [], []>} : vector<2x512xbf16>, vector<512x512xbf16>, vector<2x512xf32> -> vector<2x512xf32>
    %c0_66 = arith.constant 0 : index
    %c0_67 = arith.constant 0 : index
    %76 = vector.load %arg6[%c0_66, %c0_67] : memref<1x512xf32, #tpu.memory_space<vmem>>, vector<1x512xf32>
    %77 = vector.broadcast %76 : vector<1x512xf32> to vector<2x512xf32>
    %78 = arith.addf %75, %77 : vector<2x512xf32>
    %cst_68 = arith.constant 0.000000e+00 : f32
    %79 = vector.broadcast %cst_68 : f32 to vector<2x512xf32>
    %80 = arith.maximumf %78, %79 : vector<2x512xf32>
    %81 = arith.truncf %80 : vector<2x512xf32> to vector<2x512xbf16>
    %c0_69 = arith.constant 0 : index
    %c0_70 = arith.constant 0 : index
    %82 = vector.load %arg7[%c0_69, %c0_70] : memref<512x512xbf16, #tpu.memory_space<vmem>>, vector<512x512xbf16>
    %cst_71 = arith.constant dense<0.000000e+00> : vector<2x512xf32>
    %83 = tpu.matmul %81, %82, %cst_71 {dimension_numbers = #tpu.dot_dimension_numbers<[1], [0], [0], [1], [0, 0, 1, 1], [], []>} : vector<2x512xbf16>, vector<512x512xbf16>, vector<2x512xf32> -> vector<2x512xf32>
    %c0_72 = arith.constant 0 : index
    %c0_73 = arith.constant 0 : index
    %84 = vector.load %arg8[%c0_72, %c0_73] : memref<1x512xf32, #tpu.memory_space<vmem>>, vector<1x512xf32>
    %85 = vector.broadcast %84 : vector<1x512xf32> to vector<2x512xf32>
    %86 = arith.addf %83, %85 : vector<2x512xf32>
    %cst_74 = arith.constant 0.000000e+00 : f32
    %87 = vector.broadcast %cst_74 : f32 to vector<2x512xf32>
    %88 = arith.maximumf %86, %87 : vector<2x512xf32>
    %89 = arith.truncf %88 : vector<2x512xf32> to vector<2x512xbf16>
    %c0_75 = arith.constant 0 : index
    %c0_76 = arith.constant 0 : index
    %90 = vector.load %arg9[%c0_75, %c0_76] : memref<512x128xbf16, #tpu.memory_space<vmem>>, vector<512x128xbf16>
    %cst_77 = arith.constant dense<0.000000e+00> : vector<2x128xf32>
    %91 = tpu.matmul %89, %90, %cst_77 {dimension_numbers = #tpu.dot_dimension_numbers<[1], [0], [0], [1], [0, 0, 1, 1], [], []>} : vector<2x512xbf16>, vector<512x128xbf16>, vector<2x128xf32> -> vector<2x128xf32>
    %c0_78 = arith.constant 0 : index
    %c0_79 = arith.constant 0 : index
    %92 = vector.load %arg10[%c0_78, %c0_79] : memref<1x128xf32, #tpu.memory_space<vmem>>, vector<1x128xf32>
    %93 = vector.broadcast %92 : vector<1x128xf32> to vector<2x128xf32>
    %94 = arith.addf %91, %93 : vector<2x128xf32>
    %c0_80 = arith.constant 0 : index
    %c0_81 = arith.constant 0 : index
    %95 = vector.load %arg11[%c0_80, %c0_81] : memref<2x128xf32, #tpu.memory_space<vmem>>, vector<2x128xf32>
    tpu.vector_store %arg11[%c0_80, %c0_81], %94 {strides = array<i32>} : memref<2x128xf32, #tpu.memory_space<vmem>>, vector<2x128xf32>,
    return
  }
}

</mosaic_0001>

<bundles_post_ra>
// kernel: _forward.1
= control target key start
LH: loop header
LB: loop body
LE: loop exit
PB: predicated region body
PF: predicated region fallthrough
CT: control target
= control target key end

     0   :  { %vm256_vm0 = vcmask 293888   ;;  %vm341_vm1 = vcmask 1041408   ;;  %s7231_s0 = inlined_call_operand.vmem [shape: bf16[448,36], index: 0, kind: input, shape index: {}]   ;;  %s7232_s1 = inlined_call_operand.vmem [shape: bf16[36,64], index: 1, kind: input, shape index: {}]   ;;  %s7233_s2 = inlined_call_operand.vmem [shape: f32[1,64], index: 2, kind: input, shape index: {}]   ;;  %s7234_s3 = inlined_call_operand.vmem [shape: bf16[576,128], index: 3, kind: input, shape index: {}]   ;;  %s7235_s4 = inlined_call_operand.vmem [shape: f32[1,128], index: 4, kind: input, shape index: {}]   ;;  %s7236_s5 = inlined_call_operand.vmem [shape: bf16[512,512], index: 5, kind: input, shape index: {}]   ;;  %s7237_s6 = inlined_call_operand.vmem [shape: f32[1,512], index: 6, kind: input, shape index: {}]   ;;  %s7238_s7 = inlined_call_operand.vmem [shape: bf16[512,512], index: 7, kind: input, shape index: {}]   ;;  %s7239_s8 = inlined_call_operand.vmem [shape: f32[1,512], index: 8, kind: input, shape index: {}]   ;;  %s7240_s9 = inlined_call_operand.vmem [shape: bf16[512,128], index: 9, kind: input, shape index: {}]   ;;  %s7241_s10 = inlined_call_operand.vmem [shape: f32[1,128], index: 10, kind: input, shape index: {}]   ;;  %s7242_s11 = inlined_call_operand.hbm [shape: f32[2,128], index: 11, kind: output, shape index: {}]  }
   0x1   :  { %v5027_v0 = vld [vmem:[%s7232_s1] sm:$0xff]   ;;  %v5028_v1 = vld [vmem:[%s7232_s1 + $0x8] sm:$0xff]   ;;  %v5029_v2 = vld [vmem:[%s7232_s1 + $0x10] ss:$0 sps:$4 sm:$0x33]  }
   0x2   :  { %4922 = vmatprep.subr.bf16.mxu0 %v5027_v0  ;;  %v5030_v3 = vld [vmem:[%s7231_s0] sm:$0xff]   ;;  %v343_v4 = vsel %vm341_vm1, %v5029_v2, 0  ;;  %v5031_v5 = vld [vmem:[%s7231_s0 + $0x8] sm:$0xff]   ;;  %v5032_v6 = vld [vmem:[%s7231_s0 + $0x10] sm:$0xff]  }
   0x3   :  { %4923 = vmatpush3.bf16.msra.mxu0 %v5027_v0  ;;  %4928 = vmatprep.mubr.msk.bf16.mxu0 %vm256_vm0, %v5030_v3  ;;  %v5033_v7 = vld [vmem:[%s7231_s0 + $0x18] sm:$0xff]   ;;  %v5034_v8 = vld [vmem:[%s7231_s0 + $0x20] sm:$0xff]   ;;  %v5035_v9 = vld [vmem:[%s7231_s0 + $0x28] sm:$0xff]  }
   0x4   :  { %4924 = vmatprep.subr.bf16.mxu0 %v5028_v1  ;;  %v5036_v10 = vld [vmem:[%s7231_s0 + $0x30] sm:$0xff]   ;;  %v5037_v11 = vld [vmem:[%s7231_s0 + $0x38] sm:$0xff]   ;;  %v5038_v12 = vld [vmem:[%s7231_s0 + $0x40] sm:$0xff]  }
   0x5   :  { %v5039_v13 = vld [vmem:[%s7231_s0 + $0x48] sm:$0xff]   ;;  %v5040_v14 = vld [vmem:[%s7231_s0 + $0x50] sm:$0xff]   ;;  %v5041_v15 = vld [vmem:[%s7231_s0 + $0x58] sm:$0xff]  }
   0x6   :  { %v5042_v16 = vld [vmem:[%s7231_s0 + $0x60] sm:$0xff]   ;;  %v5043_v17 = vld [vmem:[%s7231_s0 + $0x68] sm:$0xff]   ;;  %v5044_v18 = vld [vmem:[%s7231_s0 + $0x70] sm:$0xff]  }
   0x7   :  { %4925 = vmatpush3.bf16.msra.mxu0 %v5028_v1  ;;  %v5045_v19 = vld [vmem:[%s7231_s0 + $0x78] sm:$0xff]   ;;  %v5046_v20 = vld [vmem:[%s7231_s0 + $0x80] sm:$0xff]   ;;  %v5047_v21 = vld [vmem:[%s7231_s0 + $0x88] sm:$0xff]  }
   0x8   :  { %5024 = vmatprep.subr.msk.bf16.mxu0 %vm341_vm1, %v5029_v2  ;;  %v5048_v22 = vld [vmem:[%s7231_s0 + $0x90] sm:$0xff]   ;;  %v5049_v23 = vld [vmem:[%s7231_s0 + $0x98] sm:$0xff]   ;;  %v5050_v24 = vld [vmem:[%s7231_s0 + $0xa0] sm:$0xff]  }
   0x9   :  { %v5051_v25 = vld [vmem:[%s7231_s0 + $0xa8] sm:$0xff]   ;;  %v5052_v26 = vld [vmem:[%s7231_s0 + $0xb0] sm:$0xff]   ;;  %v5053_v27 = vld [vmem:[%s7231_s0 + $0xb8] sm:$0xff]  }
   0xa   :  { %v5054_v28 = vld [vmem:[%s7231_s0 + $0xc0] sm:$0xff]   ;;  %v5055_v29 = vld [vmem:[%s7231_s0 + $0xc8] sm:$0xff]   ;;  %v5056_v30 = vld [vmem:[%s7231_s0 + $0xd0] sm:$0xff]  }
   0xb   :  { %4927 = vmatpush3.bf16.msra.mxu0 %v343_v4  ;;  %v5057_v31 = vld [vmem:[%s7231_s0 + $0xd8] sm:$0xff]  }
   0xe   :  { %4929 = vmatmul.mubr.msk.bf16.vlgmr.msra.gmra.mrb[0].mxu0 %vm256_vm0, %v5031_v5 }
   0xf   :  { %4932 = vmatprep.mubr.msk.bf16.mxu0 %vm256_vm0, %v5032_v6 }
  0x16   :  { %4933 = vmatmul.mubr.msk.bf16.gmra.mrb[4].mxu0 %vm256_vm0, %v5033_v7 }
  0x17   :  { %4936 = vmatprep.mubr.msk.bf16.mxu0 %vm256_vm0, %v5034_v8 }
  0x1e   :  { %4937 = vmatmul.mubr.msk.bf16.gmra.mrb[8].mxu0 %vm256_vm0, %v5035_v9 }
  0x1f   :  { %4940 = vmatprep.mubr.msk.bf16.mxu0 %vm256_vm0, %v5036_v10 }
  0x26   :  { %4941 = vmatmul.mubr.msk.bf16.gmra.mrb[12].mxu0 %vm256_vm0, %v5037_v11 }
  0x27   :  { %4944 = vmatprep.mubr.msk.bf16.mxu0 %vm256_vm0, %v5038_v12 }
  0x2e   :  { %4945 = vmatmul.mubr.msk.bf16.gmra.mrb[16].mxu0 %vm256_vm0, %v5039_v13 }
  0x2f   :  { %4948 = vmatprep.mubr.msk.bf16.mxu0 %vm256_vm0, %v5040_v14 }
  0x36   :  { %4949 = vmatmul.mubr.msk.bf16.gmra.mrb[20].mxu0 %vm256_vm0, %v5041_v15 }
  0x37   :  { %4952 = vmatprep.mubr.msk.bf16.mxu0 %vm256_vm0, %v5042_v16 }
  0x3e   :  { %4953 = vmatmul.mubr.msk.bf16.gmra.mrb[24].mxu0 %vm256_vm0, %v5043_v17 }
  0x3f   :  { %4956 = vmatprep.mubr.msk.bf16.mxu0 %vm256_vm0, %v5044_v18 }
  0x46   :  { %4957 = vmatmul.mubr.msk.bf16.gmra.mrb[28].mxu0 %vm256_vm0, %v5045_v19 }
  0x47   :  { %4960 = vmatprep.mubr.msk.bf16.mxu0 %vm256_vm0, %v5046_v20 }
  0x4e   :  { %4961 = vmatmul.mubr.msk.bf16.gmra.mrb[32].mxu0 %vm256_vm0, %v5047_v21 }
  0x4f   :  { %4964 = vmatprep.mubr.msk.bf16.mxu0 %vm256_vm0, %v5048_v22 }
  0x56   :  { %4965 = vmatmul.mubr.msk.bf16.gmra.mrb[36].mxu0 %vm256_vm0, %v5049_v23 }
  0x57   :  { %4968 = vmatprep.mubr.msk.bf16.mxu0 %vm256_vm0, %v5050_v24 }
  0x5e   :  { %4969 = vmatmul.mubr.msk.bf16.gmra.mrb[40].mxu0 %vm256_vm0, %v5051_v25 }
  0x5f   :  { %4972 = vmatprep.mubr.msk.bf16.mxu0 %vm256_vm0, %v5052_v26 }
  0x66   :  { %4973 = vmatmul.mubr.msk.bf16.gmra.mrb[44].mxu0 %vm256_vm0, %v5053_v27 }
  0x67   :  { %4976 = vmatprep.mubr.msk.bf16.mxu0 %vm256_vm0, %v5054_v28 }
  0x6e   :  { %4977 = vmatmul.mubr.msk.bf16.gmra.mrb[48].mxu0 %vm256_vm0, %v5055_v29 }
  0x6f   :  { %4980 = vmatprep.mubr.msk.bf16.mxu0 %vm256_vm0, %v5056_v30 }
  0x76   :  { %4981 = vmatmul.mubr.msk.bf16.gmra.mrb[52].mxu0 %vm256_vm0, %v5057_v31 }
  0x77   :  { %16 = vsyncpa [#allocation6], 0  ;;  %v5083_v58 = vld [vmem:[%s7234_s3 + $0x40] sm:$0xff]   ;;  %v5085_v60 = vld [vmem:[%s7234_s3 + $0x48] sm:$0xff]   ;;  %vm686_vm2 = vcmask 523264   ;;  %vm834_vm3 = vcmask 1045508  }
  0x78   :  { %v5084_v59 = vld [vmem:[%s7234_s3] sm:$0xff]   ;;  %4790 = vmatprep.subr.bf16.mxu1 %v5083_v58  ;;  %v5086_v61 = vld [vmem:[%s7234_s3 + $0x8] sm:$0xff]   ;;  %v5087_v63 = vld [vmem:[%s7234_s3 + $0x50] sm:$0xff]   ;;  %vm755_vm4 = vcmask 1042432   ;;  %vm756_vm5 = vcmask 1046532   ;;  %vm723_vm6 = vcmask 519168  }
  0x79   :  { %4791 = vmatpush3.bf16.msra.mxu1 %v5084_v59  ;;  %v5088_v6 = vld [vmem:[%s7234_s3 + $0x10] sm:$0xff]   ;;  %v5873_v29 = vld [vmem:[%s7233_s2] ss:$0 sm:$0xff]  ;;  %vm5930_vm7 = vmor %vm755_vm4, %vm756_vm5  ;;  %s5591_s24 = smov 64   ;;  %vm801_vm9 = vcmask 1043968   ;;  %s5592_s17 = smov [#allocation5]  }
  0x7a   :  { %4792 = vmatprep.subr.bf16.mxu1 %v5085_v60  ;;  %vm5945_vm8 = vmor %vm341_vm1, %vm834_vm3 }
  0x7d   :  { %4793 = vmatpush3.bf16.msra.mxu1 %v5086_v61 }
  0x7e   :  { %4794 = vmatprep.subr.bf16.mxu1 %v5087_v63 }
  0x81   :  { %4795 = vmatpush3.bf16.msra.mxu1 %v5088_v6 }
  0xe1   :  { %v5776_v32 = vpop.f32.mrb[0].mxu0 }
  0xe2   :  { %v5778_v33 = vpop.f32.mrb[1].mxu0 }
  0xe3   :  { %v5780_v34 = vpop.f32.mrb[2].mxu0 }
  0xe4   :  { %v5782_v35 = vpop.f32.mrb[3].mxu0 }
  0xe9   :  { %v5784_v36 = vpop.f32.mrb[4].mxu0 }
  0xea   :  { %v5786_v37 = vpop.f32.mrb[5].mxu0 }
  0xeb   :  { %v5788_v38 = vpop.f32.mrb[6].mxu0 }
  0xec   :  { %v5790_v39 = vpop.f32.mrb[7].mxu0 }
  0xf1   :  { %v5792_v40 = vpop.f32.mrb[8].mxu0 }
  0xf2   :  { %v5794_v41 = vpop.f32.mrb[9].mxu0 }
  0xf3   :  { %v5796_v42 = vpop.f32.mrb[10].mxu0 }
  0xf4   :  { %v5798_v43 = vpop.f32.mrb[11].mxu0 }
  0xf9   :  { %v4942_v44 = vpop.f32.mrb[12].mxu0 }
  0xfa   :  { %v602_v45 = vmax.f32 %v5778_v33, %v4942_v44  ;;  %v427_v46 = vpop.f32.mrb[13].mxu0 }
  0xfb   :  { %v4943_v47 = vpop.f32.mrb[14].mxu0 }
  0xfc   :  { %v603_v48 = vmax.f32 %v5782_v35, %v4943_v47  ;;  %v430_v49 = vpop.f32.mrb[15].mxu0 }
 0x101   :  { %v5802_v50 = vpop.f32.mrb[16].mxu0 }
 0x102   :  { %v606_v51 = vmax.f32 %v5786_v37, %v5802_v50  ;;  %v5806_v52 = vpop.f32.mrb[17].mxu0  ;;  %v5090_v37 = vld [vmem:[%s7234_s3 + $0x58] sm:$0xff]  }
 0x103   :  { %v604_v53 = vmax.f32 %v5776_v32, %v5806_v52  ;;  %v5810_v54 = vpop.f32.mrb[18].mxu0  ;;  %v5091_v50 = vld [vmem:[%s7234_s3 + $0x18] sm:$0xff]   ;;  %v5092_v32 = vld [vmem:[%s7234_s3 + $0x60] sm:$0xff]   ;;  %4796 = vmatprep.subr.bf16.mxu1 %v5090_v37 }
 0x104   :  { %v607_v55 = vmax.f32 %v5790_v39, %v5810_v54  ;;  %v5814_v56 = vpop.f32.mrb[19].mxu0  ;;  %4797 = vmatpush3.bf16.msra.mxu1 %v5091_v50 }
 0x105   :  { %v605_v57 = vmax.f32 %v5780_v34, %v5814_v56  ;;  %4798 = vmatprep.subr.bf16.mxu1 %v5092_v32  ;;  %v5099_v32 = vld [vmem:[%s7234_s3 + $0x30] sm:$0xff]  }
 0x109   :  { %v5830_v62 = vpop.f32.mrb[20].mxu0 }
 0x10a   :  { %v610_v0 = vmax.f32 %v5794_v41, %v5830_v62  ;;  %v5837_v1 = vpop.f32.mrb[21].mxu0 }
 0x10b   :  { %v608_v2 = vmax.f32 %v5784_v36, %v5837_v1  ;;  %v5841_v3 = vpop.f32.mrb[22].mxu0 }
 0x10c   :  { %v611_v4 = vmax.f32 %v5798_v43, %v5841_v3  ;;  %v5845_v5 = vpop.f32.mrb[23].mxu0  ;;  %v5097_v3 = vld [vmem:[%s7234_s3 + $0x28] sm:$0xff]  }
 0x10d   :  { %v609_v7 = vmax.f32 %v5788_v38, %v5845_v5  ;;  %v5098_v38 = vld [vmem:[%s7234_s3 + $0x70] sm:$0xff]  }
 0x111   :  { %v4954_v8 = vpop.f32.mrb[24].mxu0 }
 0x112   :  { %v5852_v9 = vpop.f32.mrb[25].mxu0 }
 0x113   :  { %v612_v10 = vmax.f32 %v5792_v40, %v5852_v9  ;;  %v4955_v11 = vpop.f32.mrb[26].mxu0 }
 0x114   :  { %v5856_v12 = vpop.f32.mrb[27].mxu0 }
 0x115   :  { %v613_v13 = vmax.f32 %v5796_v42, %v5856_v12  ;;  %v5105_v42 = vld [vmem:[%s7234_s3 + $0xc0] sm:$0xff]  }
 0x119   :  { %v4958_v14 = vpop.f32.mrb[28].mxu0 }
 0x11a   :  { %v491_v15 = vpop.f32.mrb[29].mxu0 }
 0x11b   :  { %v4959_v16 = vpop.f32.mrb[30].mxu0 }
 0x11c   :  { %v494_v17 = vpop.f32.mrb[31].mxu0 }
 0x121   :  { %v5860_v18 = vpop.f32.mrb[32].mxu0 }
 0x122   :  { %v507_v19 = vpop.f32.mrb[33].mxu0 }
 0x123   :  { %v5862_v20 = vpop.f32.mrb[34].mxu0 }
 0x124   :  { %v510_v21 = vpop.f32.mrb[35].mxu0 }
 0x129   :  { %v5864_v22 = vpop.f32.mrb[36].mxu0 }
 0x12a   :  { %v523_v23 = vpop.f32.mrb[37].mxu0 }
 0x12b   :  { %v5866_v24 = vpop.f32.mrb[38].mxu0 }
 0x12c   :  { %v5868_v25 = vpop.f32.mrb[39].mxu0 }
 0x131   :  { %v4970_v26 = vpop.f32.mrb[40].mxu0 }
 0x132   :  { %v616_v27 = vmax.f32 %v491_v15, %v4970_v26  ;;  %v539_v28 = vpop.f32.mrb[41].mxu0 }
 0x133   :  { %v4971_v30 = vpop.f32.mrb[42].mxu0 }
 0x134   :  { %v630_v31 = vmax.f32 %v602_v45, %v616_v27  ;;  %v617_v33 = vmax.f32 %v494_v17, %v4971_v30  ;;  %v542_v35 = vpop.f32.mrb[43].mxu0 }
 0x136   :  { %v651_v44 = vadd.f32 %v5873_v29, %v630_v31  ;;  %v631_v46 = vmax.f32 %v603_v48, %v617_v33 }
 0x138   :  { %v652_v47 = vadd.f32 %v5873_v29, %v631_v46  ;;  %v665_v58 = vmax.f32 %v651_v44, 0.0 }
 0x139   :  { %v4974_v49 = vpop.f32.mrb[44].mxu0 }
 0x13a   :  { %v666_v59 = vmax.f32 %v652_v47, 0.0  ;;  %v620_v60 = vmax.f32 %v507_v19, %v4974_v49  ;;  %v555_v61 = vpop.f32.mrb[45].mxu0 }
 0x13b   :  { %v618_v63 = vmax.f32 %v4958_v14, %v555_v61  ;;  %v4975_v6 = vpop.f32.mrb[46].mxu0 }
 0x13c   :  { %v679_v8 = vpack.c.bf16 %v666_v59, %v665_v58  ;;  %v634_v45 = vmax.f32 %v606_v51, %v620_v60  ;;  %v621_v11 = vmax.f32 %v510_v21, %v4975_v6  ;;  %v558_v15 = vpop.f32.mrb[47].mxu0 }
 0x13d   :  { %v632_v48 = vmax.f32 %v604_v53, %v618_v63  ;;  %v619_v17 = vmax.f32 %v4959_v16, %v558_v15 }
 0x13e   :  { %687 = vst.msk [vmem:[#allocation2] sm:$0xff] %vm686_vm2, %v679_v8  ;;  %v655_v19 = vadd.f32 %v5873_v29, %v634_v45  ;;  %v635_v14 = vmax.f32 %v607_v55, %v621_v11  ;;  %v5093_v55 = vld [vmem:[%s7234_s3 + $0x20] sm:$0xff]  }
 0x13f   :  { %v653_v51 = vadd.f32 %v5873_v29, %v632_v48  ;;  %v633_v52 = vmax.f32 %v605_v57, %v619_v17  ;;  %4799 = vmatpush3.bf16.msra.mxu1 %v5093_v55  ;;  %v5156_v8 = vld [vmem:[%s7236_s5 + $0x24] ss:$16 sps:$4 sm:$0xff]  }
 0x140   :  { %v656_v39 = vadd.f32 %v5873_v29, %v635_v14  ;;  %v669_v16 = vmax.f32 %v655_v19, 0.0 }
 0x141   :  { %v654_v53 = vadd.f32 %v5873_v29, %v633_v52  ;;  %v4978_v54 = vpop.f32.mrb[48].mxu0  ;;  %v667_v28 = vmax.f32 %v653_v51, 0.0 }
 0x142   :  { %v670_v21 = vmax.f32 %v656_v39, 0.0  ;;  %v624_v26 = vmax.f32 %v523_v23, %v4978_v54  ;;  %v571_v27 = vpop.f32.mrb[49].mxu0  ;;  %v5096_v23 = vld [vmem:[%s7234_s3 + $0x68] sm:$0xff]   ;;  %v5100_v39 = vld [vmem:[%s7234_s3 + $0x78] sm:$0xff]  }
 0x143   :  { %v668_v34 = vmax.f32 %v654_v53, 0.0  ;;  %v622_v56 = vmax.f32 %v5860_v18, %v571_v27  ;;  %v4979_v57 = vpop.f32.mrb[50].mxu0  ;;  %4800 = vmatprep.subr.bf16.mxu1 %v5096_v23 }
 0x144   :  { %v681_v30 = vpack.c.bf16 %v670_v21, %v669_v16  ;;  %v638_v31 = vmax.f32 %v610_v0, %v624_v26  ;;  %v625_v33 = vmax.f32 %v5868_v25, %v4979_v57  ;;  %v574_v35 = vpop.f32.mrb[51].mxu0  ;;  %4801 = vmatpush3.bf16.msra.mxu1 %v5097_v3  ;;  %v5101_v26 = vld [vmem:[%s7234_s3 + $0x38] sm:$0xff]  }
 0x145   :  { %v680_v44 = vpack.c.bf16 %v668_v34, %v667_v28  ;;  %v636_v18 = vmax.f32 %v608_v2, %v622_v56  ;;  %v623_v46 = vmax.f32 %v5862_v20, %v574_v35  ;;  %v731_v47 = vld [vmem:[#allocation2] sm:$0xfe]  ;;  %4802 = vmatprep.subr.bf16.mxu1 %v5098_v38 }
 0x146   :  { %v694_v49 = vld [vmem:[#allocation2] sm:$0xff]  ;;  %689 = vst.msk [vmem:[#allocation2 + $0x10] sm:$0xff] %vm686_vm2, %v681_v30  ;;  %v659_v62 = vadd.f32 %v5873_v29, %v638_v31  ;;  %v639_v0 = vmax.f32 %v611_v4, %v625_v33  ;;  %v4300_v25 = vcombine.low %v731_v47, %v731_v47  ;;  %v4301_v58 = vcombine.high %v731_v47, %v731_v47 }
 0x147   :  { %v809_v41 = vld [vmem:[#allocation2] sm:$0xfc]  ;;  %688 = vst.msk [vmem:[#allocation2 + $0x8] sm:$0xff] %vm686_vm2, %v680_v44  ;;  %v657_v36 = vadd.f32 %v5873_v29, %v636_v18  ;;  %v637_v1 = vmax.f32 %v609_v7, %v623_v46  ;;  %v4293_v20 = vcombine.low %v694_v49, %v694_v49  ;;  %v4294_v50 = vcombine.high %v694_v49, %v694_v49 }
 0x148   :  { %v4309_v43 = vcombine.low %v809_v41, %v809_v41  ;;  %v660_v4 = vadd.f32 %v5873_v29, %v639_v0  ;;  %v4308_v59 = vrot.slane %v4300_v25, 9  ;;  %v760_v60 = vrot.slane %v4301_v58, 5  ;;  %4803 = vmatpush3.bf16.msra.mxu1 %v5099_v32  ;;  %v5154_v2 = vld [vmem:[%s7236_s5 + $0x20] ss:$16 sps:$4 sm:$0xff]  }
 0x149   :  { %v673_v5 = vmax.f32 %v659_v62, 0.0  ;;  %v658_v7 = vadd.f32 %v5873_v29, %v637_v1  ;;  %v4982_v61 = vpop.f32.mrb[52].mxu0  ;;  %724 = vst.msk [vmem:[#allocation3] sm:$0xf] %vm723_vm6, %v4293_v20  ;;  %v4310_v63 = vcombine.high %v809_v41, %v809_v41  ;;  %v671_v45 = vmax.f32 %v657_v36, 0.0  ;;  %4804 = vmatprep.subr.bf16.mxu1 %v5100_v39 }
 0x14a   :  { %v4317_v6 = vrot.slane %v4309_v43, 10  ;;  %v674_v11 = vmax.f32 %v660_v4, 0.0  ;;  %v587_v15 = vpop.f32.mrb[53].mxu0  ;;  %v761_v48 = vsel %vm5930_vm7, %v4308_v59, %v760_v60  ;;  %725 = vst.msk [vmem:[#allocation3 + $0x14] sm:$0xf] %vm723_vm6, %v4294_v50  ;;  %v762_v28 = vrot.slane %v760_v60, 4 }
 0x14b   :  { %v672_v17 = vmax.f32 %v658_v7, 0.0  ;;  %v626_v19 = vmax.f32 %v5864_v22, %v587_v15  ;;  %780 = vrot.lane.b32.xlu0 %v761_v48, %s5591_s24  ;;  %v4983_v14 = vpop.f32.mrb[54].mxu0  ;;  %v5953_v37 = vrot.slane %v4310_v63, 6 }
 0x14c   :  { %v683_v51 = vpack.c.bf16 %v674_v11, %v673_v5  ;;  %v590_v52 = vpop.f32.mrb[55].mxu0  ;;  %4805 = vmatpush3.bf16.msra.mxu1 %v5101_v26 }
 0x14d   :  { %v682_v53 = vpack.c.bf16 %v672_v17, %v671_v45  ;;  %v640_v22 = vmax.f32 %v612_v10, %v626_v19  ;;  %v627_v54 = vmax.f32 %v5866_v24, %v590_v52  ;;  %v839_v55 = vsel %vm5945_vm8, %v4317_v6, %v5953_v37  ;;  %v873_v21 = vld [vmem:[#allocation2 + $0x10] sm:$0xff]  ;;  %4830 = vmatprep.subr.bf16.mxu1 %v5105_v42 }
 0x14e   :  { %691 = vst.msk [vmem:[#allocation2 + $0x20] sm:$0xff] %vm686_vm2, %v683_v51  ;;  %v872_v16 = vld [vmem:[#allocation2 + $0x8] sm:$0xff]  ;;  %v5987_v56 = vcombine.low %v873_v21, %v873_v21  ;;  %v5996_v12 = vcombine.high %v873_v21, %v873_v21  ;;  %v1166_v49 = vld [vmem:[#allocation2 + $0x10] sm:$0xfc] }
 0x14f   :  { %865 = vst.msk [vmem:[#allocation3 + $0x4] sm:$0xf] %vm723_vm6, %v839_v55  ;;  %v661_v40 = vadd.f32 %v5873_v29, %v640_v22  ;;  %v641_v9 = vmax.f32 %v613_v13, %v627_v54  ;;  %v5976_v10 = vcombine.low %v872_v16, %v872_v16  ;;  %v5978_v24 = vcombine.high %v872_v16, %v872_v16  ;;  %v982_v35 = vld [vmem:[#allocation2 + $0x8] sm:$0xfc]  ;;  %v1092_v60 = vld [vmem:[#allocation2 + $0x10] sm:$0xfe] }
 0x150   :  { %690 = vst.msk [vmem:[#allocation2 + $0x18] sm:$0xff] %vm686_vm2, %v682_v53  ;;  %v6015_v46 = vrot.slane %v5987_v56, 5  ;;  %v4335_v58 = vcombine.high %v982_v35, %v982_v35  ;;  %v4360_v43 = vcombine.high %v1166_v49, %v1166_v49  ;;  %v772_v59 = vrot.slane %v5996_v12, 5 }
 0x151   :  { %v662_v27 = vadd.f32 %v5873_v29, %v641_v9  ;;  %894 = vrot.lane.b32.xlu1 %v5976_v10, %s5591_s24  ;;  %v763_v34 = vrot.slane %v5976_v10, 5  ;;  %726 = vst.msk [vmem:[#allocation3 + $0x28] sm:$0xf] %vm723_vm6, %v5976_v10  ;;  %727 = vst.msk [vmem:[#allocation3 + $0x3c] sm:$0xf] %vm723_vm6, %v5978_v24  ;;  %v675_v13 = vmax.f32 %v661_v40, 0.0  ;;  %v4334_v45 = vcombine.low %v982_v35, %v982_v35 }
 0x152   :  { %728 = vst.msk [vmem:[#allocation3 + $0x50] sm:$0xf] %vm723_vm6, %v5987_v56  ;;  %1085 = vst.msk [vmem:[#allocation3 + $0xc] sm:$0xf] %vm723_vm6, %v5987_v56  ;;  %v766_v30 = vrot.slane %v5978_v24, 5  ;;  %v771_v4 = vrot.slane %v6015_v46, 4  ;;  %v4350_v17 = vcombine.low %v1092_v60, %v1092_v60  ;;  %v4351_v19 = vcombine.high %v1092_v60, %v1092_v60 }
 0x153   :  { %v676_v29 = vmax.f32 %v662_v27, 0.0  ;;  %v764_v57 = vsel %vm5930_vm7, %v762_v28, %v763_v34  ;;  %729 = vst.msk [vmem:[#allocation3 + $0x64] sm:$0xf] %vm723_vm6, %v5996_v12  ;;  %1086 = vst.msk [vmem:[#allocation3 + $0x20] sm:$0xf] %vm723_vm6, %v5996_v12  ;;  %v765_v18 = vrot.slane %v763_v34, 4  ;;  %v4359_v14 = vcombine.low %v1166_v49, %v1166_v49 }
 0x154   :  { %782 = vrot.lane.b32.xlu0 %v764_v57, %s5591_s24  ;;  %v768_v0 = vrot.slane %v766_v30, 4  ;;  %v6047_v11 = vrot.slane %v4335_v58, 6  ;;  %v6060_v50 = vrot.slane %v772_v59, 4  ;;  %v6062_v32 = vrot.slane %v4360_v43, 6  ;;  %v922_v60 = vld [vmem:[#allocation2 + $0x8] sm:$0xfe] }
 0x155   :  { %v1168_v31 = vld [vmem:[#allocation2 + $0x20] sm:$0xff]  ;;  %v684_v33 = vpack.c.bf16 %v676_v29, %v675_v13  ;;  %896 = vrot.lane.b32.xlu1 %v5978_v24, %s5591_s24  ;;  %v767_v3 = vsel %vm5930_vm7, %v765_v18, %v766_v30  ;;  %v6067_v39 = vsel %vm5930_vm7, %v771_v4, %v772_v59  ;;  %v4342_v55 = vrot.slane %v4334_v45, 10 }
 0x156   :  { %v6012_v23 = vcombine.low %v1168_v31, %v1168_v31  ;;  %v6037_v38 = vcombine.high %v1168_v31, %v1168_v31  ;;  %v770_v63 = vsel %vm5930_vm7, %v768_v0, %v6015_v46  ;;  %v1011_v16 = vrot.slane %v5987_v56, 6  ;;  %v5074_v0 = vld [vmem:[#allocation2 + $0x20] ss:$0 sps:$4 sm:$0xff]   ;;  %977 = vst.msk [vmem:[#allocation3 + $0x30] sm:$0xf] %vm723_vm6, %v6067_v39 }
 0x157   :  { %v1167_v44 = vld [vmem:[#allocation2 + $0x18] sm:$0xff]  ;;  %692 = vst.msk [vmem:[#allocation2 + $0x28] sm:$0xff] %vm686_vm2, %v684_v33  ;;  %v1010_v21 = vrot.slane %v6047_v11, 4  ;;  %v4358_v40 = vrot.slane %v4350_v17, 9  ;;  %v1118_v9 = vrot.slane %v4351_v19, 5  ;;  %v6079_v42 = vrot.slane %v4359_v14, 10 }
 0x158   :  { %v734_v47 = vld [vmem:[#allocation2 + $0x18] sm:$0x1f]  ;;  %v4361_v41 = vcombine.low %v1167_v44, %v1167_v44  ;;  %v6017_v62 = vcombine.high %v1167_v44, %v1167_v44  ;;  %898 = vrot.lane.b32.xlu0 %v5987_v56, %s5591_s24  ;;  %1089 = vst.msk [vmem:[#allocation3 + $0x5c] sm:$0xf] %vm723_vm6, %v6012_v23  ;;  %v1201_v5 = vrot.slane %v6012_v23, 6  ;;  %v1204_v51 = vrot.slane %v6037_v38, 6 }
 0x159   :  { %v4306_v25 = vcombine.low %v734_v47, %v734_v47  ;;  %v5113_v36 = vld [vmem:[#allocation2 + $0x18] ss:$0 sps:$4 sm:$0xff]   ;;  %900 = vrot.lane.b32.xlu1 %v5996_v12, %s5591_s24  ;;  %v4307_v53 = vcombine.high %v734_v47, %v734_v47  ;;  %v1194_v13 = vrot.slane %v6062_v32, 4  ;;  %v1009_v30 = vsel %vm5945_vm8, %v4342_v55, %v6047_v11  ;;  %v925_v19 = vld [vmem:[#allocation2 + $0x20] sm:$0x1f] }
 0x15a   :  { %v6024_v1 = vrot.slane %v4361_v41, 6  ;;  %v1198_v20 = vrot.slane %v6017_v62, 6  ;;  %1087 = vst.msk [vmem:[#allocation3 + $0x34] sm:$0xf] %vm723_vm6, %v4361_v41  ;;  %1088 = vst.msk [vmem:[#allocation3 + $0x48] sm:$0xf] %vm723_vm6, %v6017_v62  ;;  %v1012_v44 = vsel %vm5945_vm8, %v1010_v21, %v1011_v16  ;;  %v1119_v18 = vsel %vm5930_vm7, %v4358_v40, %v1118_v9 }
 0x15b   :  { %730 = vst.msk [vmem:[#allocation3 + $0x78] sm:$0xf] %vm723_vm6, %v5113_v36  ;;  %v775_v6 = vrot.slane %v4306_v25, 5  ;;  %v6077_v26 = vrot.slane %v4361_v41, 5  ;;  %v6082_v29 = vrot.slane %v1201_v5, 4  ;;  %v778_v57 = vrot.slane %v4307_v53, 5 }
 0x15c   :  { %v1197_v7 = vrot.slane %v6024_v1, 4  ;;  %v6041_v61 = vrot.slane %v1198_v20, 4  ;;  %784 = vrot.lane.b32.xlu0 %v767_v3, %s5591_s24  ;;  %v6087_v56 = vrot.slane %v1204_v51, 4  ;;  %v1013_v31 = vrot.slane %v1011_v16, 4  ;;  %v812_v43 = vld [vmem:[#allocation2 + $0x18] sm:$0x3f] }
 0x15d   :  { %786 = vrot.lane.b32.xlu1 %v770_v63, %s5591_s24  ;;  %v776_v22 = vsel %vm5930_vm7, %v6060_v50, %v775_v6  ;;  %v777_v54 = vrot.slane %v775_v6, 4  ;;  %v1014_v33 = vrot.slane %v5996_v12, 6  ;;  %v1123_v47 = vrot.slane %v6077_v26, 4  ;;  %1090 = vst.msk [vmem:[#allocation3 + $0x70] sm:$0xf] %vm723_vm6, %v6037_v38 }
 0x15e   :  { %v6051_v15 = vsel %vm5945_vm8, %v1197_v7, %v1198_v20  ;;  %v1202_v48 = vsel %vm5945_vm8, %v6041_v61, %v1201_v5  ;;  %v1169_v52 = vld [vmem:[#allocation2 + $0x28] sm:$0x3f]  ;;  %v1120_v12 = vrot.slane %v1118_v9, 4  ;;  %v1124_v25 = vrot.slane %v6017_v62, 5 }
 0x15f   :  { %1221 = vst.msk [vmem:[#allocation3 + $0x38] sm:$0xf] %vm723_vm6, %v6051_v15  ;;  %1222 = vst.msk [vmem:[#allocation3 + $0x4c] sm:$0xf] %vm723_vm6, %v1202_v48  ;;  %v5138_v27 = vld [vmem:[#allocation2 + $0x28] ss:$0 sps:$4 sm:$0xff]   ;;  %v4365_v28 = vcombine.low %v1169_v52, %v1169_v52  ;;  %v4366_v34 = vcombine.high %v1169_v52, %v1169_v52  ;;  %v779_v35 = vsel %vm5930_vm7, %v777_v54, %v778_v57 }
 0x160   :  { %788 = vrot.lane.b32.xlu0 %v6067_v39, %s5591_s24  ;;  %1091 = vst.msk [vmem:[#allocation3 + $0x84] sm:$0xf] %vm723_vm6, %v5138_v27  ;;  %v840_v58 = vrot.slane %v5953_v37, 4  ;;  %v841_v36 = vrot.slane %v5976_v10, 6  ;;  %v844_v20 = vrot.slane %v5978_v24, 6  ;;  %v1122_v3 = vsel %vm5930_vm7, %v1120_v12, %v6077_v26 }
 0x161   :  { %790 = vrot.lane.b32.xlu1 %v776_v22, %s5591_s24  ;;  %v6103_v49 = vrot.slane %v4365_v28, 6  ;;  %v1015_v4 = vsel %vm5945_vm8, %v1013_v31, %v1014_v33  ;;  %v6117_v59 = vrot.slane %v1014_v33, 4  ;;  %v4315_v5 = vcombine.low %v812_v43, %v812_v43 }
 0x162   :  { %v842_v37 = vsel %vm5945_vm8, %v840_v58, %v841_v36  ;;  %v843_v10 = vrot.slane %v841_v36, 4  ;;  %v846_v24 = vrot.slane %v844_v20, 4  ;;  %v4316_v7 = vcombine.high %v812_v43, %v812_v43  ;;  %869 = vst.msk [vmem:[#allocation3 + $0x54] sm:$0xf] %vm723_vm6, %v1015_v4 }
 0x163   :  { %866 = vst.msk [vmem:[#allocation3 + $0x18] sm:$0xf] %vm723_vm6, %v842_v37  ;;  %v4325_v45 = vcombine.low %v922_v60, %v922_v60  ;;  %v853_v11 = vrot.slane %v4315_v5, 6  ;;  %v4326_v17 = vcombine.high %v922_v60, %v922_v60  ;;  %v4331_v54 = vcombine.low %v925_v19, %v925_v19  ;;  %v5159_v60 = vld [vmem:[%s7236_s5 + $0x44] ss:$16 sps:$4 sm:$0xff]  }
 0x164   :  { %902 = vrot.lane.b32.xlu0 %v4361_v41, %s5591_s24  ;;  %v6105_v41 = vrot.slane %v4366_v34, 6  ;;  %v845_v63 = vsel %vm5945_vm8, %v843_v10, %v844_v20  ;;  %v848_v6 = vsel %vm5945_vm8, %v846_v24, %v1011_v16  ;;  %v856_v48 = vrot.slane %v4316_v7, 6  ;;  %v5157_v37 = vld [vmem:[%s7236_s5 + $0x40] ss:$16 sps:$4 sm:$0xff]  }
 0x165   :  { %904 = vrot.lane.b32.xlu1 %v6017_v62, %s5591_s24  ;;  %v1209_v62 = vrot.slane %v6103_v49, 4  ;;  %867 = vst.msk [vmem:[#allocation3 + $0x2c] sm:$0xf] %vm723_vm6, %v845_v63  ;;  %868 = vst.msk [vmem:[#allocation3 + $0x40] sm:$0xf] %vm723_vm6, %v848_v6  ;;  %v4333_v14 = vrot.slane %v4325_v45, 9  ;;  %v854_v52 = vsel %vm5945_vm8, %v6117_v59, %v853_v11  ;;  %v958_v9 = vsel %vm5930_vm7, %v6060_v50, %v6077_v26 }
 0x166   :  { %v855_v53 = vrot.slane %v853_v11, 4  ;;  %v948_v22 = vrot.slane %v4326_v17, 5  ;;  %870 = vst.msk [vmem:[#allocation3 + $0x68] sm:$0xf] %vm723_vm6, %v854_v52  ;;  %v962_v55 = vrot.slane %v1124_v25, 4  ;;  %v961_v27 = vsel %vm5930_vm7, %v1123_v47, %v1124_v25  ;;  %v5106_v45 = vld [vmem:[%s7234_s3 + $0x80] sm:$0xff]  }
 0x167   :  { %v963_v28 = vrot.slane %v4331_v54, 5  ;;  %978 = vst.msk [vmem:[#allocation3 + $0x44] sm:$0xf] %vm723_vm6, %v958_v9  ;;  %979 = vst.msk [vmem:[#allocation3 + $0x58] sm:$0xf] %vm723_vm6, %v961_v27  ;;  %v4332_v57 = vcombine.high %v925_v19, %v925_v19  ;;  %v1193_v39 = vsel %vm5945_vm8, %v6079_v42, %v6062_v32  ;;  %v1196_v50 = vsel %vm5945_vm8, %v1194_v13, %v6024_v1  ;;  %v5107_v19 = vld [vmem:[%s7234_s3 + $0xc8] sm:$0xff]  }
 0x168   :  { %792 = vrot.lane.b32.xlu0 %v779_v35, %s5591_s24  ;;  %v857_v16 = vsel %vm5945_vm8, %v855_v53, %v856_v48  ;;  %v949_v21 = vsel %vm5930_vm7, %v4333_v14, %v948_v22  ;;  %v950_v40 = vrot.slane %v948_v22, 4  ;;  %v985_v26 = vld [vmem:[#allocation2 + $0x20] sm:$0x3f]  ;;  %1219 = vst.msk [vmem:[#allocation3 + $0x10] sm:$0xf] %vm723_vm6, %v1193_v39  ;;  %v1205_v32 = vsel %vm5945_vm8, %v6082_v29, %v1204_v51  ;;  %v5108_v53 = vld [vmem:[%s7234_s3 + $0x88] sm:$0xff]  }
 0x169   :  { %906 = vrot.lane.b32.xlu1 %v5074_v0, %s5591_s24  ;;  %871 = vst.msk [vmem:[#allocation3 + $0x7c] sm:$0xf] %vm723_vm6, %v857_v16  ;;  %975 = vst.msk [vmem:[#allocation3 + $0x8] sm:$0xf] %vm723_vm6, %v949_v21  ;;  %v1208_v42 = vsel %vm5945_vm8, %v6087_v56, %v6103_v49  ;;  %v1018_v13 = vsel %vm5945_vm8, %v6117_v59, %v6024_v1  ;;  %v966_v31 = vrot.slane %v4332_v57, 5  ;;  %v1127_v56 = vrot.slane %v6012_v23, 5 }
 0x16a   :  { %v952_v34 = vsel %vm5930_vm7, %v950_v40, %v6015_v46  ;;  %v964_v46 = vsel %vm5930_vm7, %v962_v55, %v963_v28  ;;  %1220 = vst.msk [vmem:[#allocation3 + $0x24] sm:$0xf] %vm723_vm6, %v1196_v50  ;;  %1223 = vst.msk [vmem:[#allocation3 + $0x60] sm:$0xf] %vm723_vm6, %v1205_v32  ;;  %v1211_v51 = vsel %vm5945_vm8, %v1209_v62, %v6105_v41  ;;  %v1095_v29 = vld [vmem:[#allocation2 + $0x28] sm:$0x1f] }
 0x16b   :  { %976 = vst.msk [vmem:[#allocation3 + $0x1c] sm:$0xf] %vm723_vm6, %v952_v34  ;;  %980 = vst.msk [vmem:[#allocation3 + $0x6c] sm:$0xf] %vm723_vm6, %v964_v46  ;;  %v4340_v33 = vcombine.low %v985_v26, %v985_v26  ;;  %v1128_v35 = vsel %vm5930_vm7, %v962_v55, %v1127_v56  ;;  %v1130_v47 = vrot.slane %v6037_v38, 5  ;;  %v1129_v49 = vrot.slane %v1127_v56, 4 }
 0x16c   :  { %1028 = vrot.lane.b32.xlu0 %v1009_v30, %s5591_s24  ;;  %v965_v30 = vrot.slane %v963_v28, 4  ;;  %1224 = vst.msk [vmem:[#allocation3 + $0x74] sm:$0xf] %vm723_vm6, %v1208_v42  ;;  %1225 = vst.msk [vmem:[#allocation3 + $0x88] sm:$0xf] %vm723_vm6, %v1211_v51  ;;  %v4341_v0 = vcombine.high %v985_v26, %v985_v26  ;;  %v4357_v25 = vcombine.high %v1095_v29, %v1095_v29  ;;  %v5112_v22 = vld [vmem:[%s7234_s3 + $0xd0] sm:$0xff]  }
 0x16d   :  { %1030 = vrot.lane.b32.xlu1 %v1012_v44, %s5591_s24  ;;  %v4356_v44 = vcombine.low %v1095_v29, %v1095_v29  ;;  %v1132_v12 = vrot.slane %v1130_v47, 4  ;;  %v1131_v58 = vsel %vm5930_vm7, %v1129_v49, %v1130_v47  ;;  %v5153_v59 = vld [vmem:[%s7236_s5 + $0x4] ss:$16 sps:$4 sm:$0xff]   ;;  %v5115_v28 = vld [vmem:[%s7234_s3 + $0xd8] sm:$0xff]   ;;  %v5126_v56 = vld [vmem:[%s7234_s3 + $0xa8] sm:$0xff]  }
 0x16e   :  { %v967_v1 = vsel %vm5930_vm7, %v965_v30, %v966_v31  ;;  %v1026_v20 = vrot.slane %v4341_v0, 6  ;;  %2741 = vmatprep.subr.bf16.mxu0 %v5153_v59  ;;  %v5114_v9 = vld [vmem:[%s7234_s3 + $0x90] sm:$0xff]   ;;  %v5118_v39 = vld [vmem:[%s7234_s3 + $0x98] sm:$0xff]   ;;  %v5119_v50 = vld [vmem:[%s7234_s3 + $0xe0] sm:$0xff]  }
 0x16f   :  { %981 = vst.msk [vmem:[#allocation3 + $0x80] sm:$0xf] %vm723_vm6, %v967_v1  ;;  %v1133_v41 = vrot.slane %v4356_v44, 5  ;;  %v5123_v46 = vld [vmem:[%s7234_s3 + $0xa0] sm:$0xff]   ;;  %v5127_v1 = vld [vmem:[%s7234_s3 + $0xf0] sm:$0xff]   ;;  %v5129_v49 = vld [vmem:[%s7234_s3 + $0xf8] sm:$0xff]  }
 0x170   :  { %1138 = vrot.lane.b32.xlu0 %v1119_v18, %s5591_s24  ;;  %v1023_v18 = vrot.slane %v4340_v33, 6 }
 0x171   :  { %1140 = vrot.lane.b32.xlu1 %v1122_v3, %s5591_s24  ;;  %v1134_v38 = vsel %vm5930_vm7, %v1132_v12, %v1133_v41  ;;  %v5133_v12 = vld [vmem:[%s7234_s3 + $0xb8] sm:$0xff]  }
 0x172   :  { %v1024_v23 = vsel %vm5945_vm8, %v6041_v61, %v1023_v18  ;;  %v1025_v36 = vrot.slane %v1023_v18, 4  ;;  %v1136_v61 = vrot.slane %v4357_v25, 5  ;;  %v5128_v18 = vld [vmem:[%s7234_s3 + $0xb0] sm:$0xff]   ;;  %v5135_v25 = vld [vmem:[%s7234_s3 + $0x100] sm:$0xff]  }
 0x174   :  { %1032 = vrot.lane.b32.xlu0 %v1015_v4, %s5591_s24  ;;  %v1027_v43 = vsel %vm5945_vm8, %v1025_v36, %v1026_v20  ;;  %v5151_v4 = vld [vmem:[%s7236_s5] ss:$16 sps:$4 sm:$0xff]  }
 0x175   :  { %1034 = vrot.lane.b32.xlu1 %v1018_v13, %s5591_s24  ;;  %2742 = vmatpush1.bf16.msra.mxu0 %v5151_v4  ;;  %v5124_v13 = vld [vmem:[%s7234_s3 + $0xe8] sm:$0xff]  }
 0x176   :  { %2743 = vmatprep.subr.bf16.mxu0 %v5156_v8 }
 0x178   :  { %1142 = vrot.lane.b32.xlu0 %v961_v27, %s5591_s24 }
 0x179   :  { %1144 = vrot.lane.b32.xlu1 %v1128_v35, %s5591_s24  ;;  %2744 = vmatpush1.bf16.msra.mxu0 %v5154_v2 }
 0x17a   :  { %2745 = vmatprep.subr.bf16.mxu0 %v5159_v60 }
 0x17c   :  { %1036 = vrot.lane.b32.xlu0 %v6051_v15, %s5591_s24  ;;  %v1135_v15 = vrot.slane %v1133_v41, 4 }
 0x17d   :  { %1038 = vrot.lane.b32.xlu1 %v1024_v23, %s5591_s24  ;;  %2746 = vmatpush1.bf16.msra.mxu0 %v5157_v37  ;;  %v5145_v37 = vld [vmem:[%s7234_s3 + $0x118] sm:$0xff]  }
 0x17e   :  { %v1137_v3 = vsel %vm5930_vm7, %v1135_v15, %v1136_v61  ;;  %v5139_v15 = vld [vmem:[%s7234_s3 + $0x108] sm:$0xff]  }
 0x180   :  { %1146 = vrot.lane.b32.xlu0 %v1131_v58, %s5591_s24 }
 0x181   :  { %1148 = vrot.lane.b32.xlu1 %v1134_v38, %s5591_s24 }
 0x184   :  { %1040 = vrot.lane.b32.xlu0 %v1027_v43, %s5591_s24 }
 0x185   :  { %1150 = vrot.lane.b32.xlu1 %v1137_v3, %s5591_s24  ;;  %v5142_v3 = vld [vmem:[%s7234_s3 + $0x110] sm:$0xff]   ;;  %s4225_s3 = sshll.u32 %s5592_s17, 4  ;;  %s4226_s3 = int_to_ptr.vmem [resolvable:$true] %s4225_s3 }
 0x186   :  { %p5572_p1 = scmp.lt.s32.totalorder %s4226_s3, %s4226_s3 }
 0x1bd   :  { %v781_v10 = vpop.permute.xlu0 %780 }
 0x1be   :  { %802 = vst.msk [vmem:[#allocation3] sm:$0xf] %vm801_vm9, %v781_v10 }
 0x1c3   :  { %v895_v24 = vpop.permute.xlu1 %894 }
 0x1c4   :  { %915 = vst.msk [vmem:[#allocation3 + $0x4] sm:$0xf] %vm801_vm9, %v895_v24 }
 0x1c6   :  { %v783_v62 = vpop.permute.xlu0 %782 }
 0x1c7   :  { %803 = vst.msk [vmem:[#allocation3 + $0x14] sm:$0xf] %vm801_vm9, %v783_v62  ;;  %v897_v5 = vpop.permute.xlu1 %896 }
 0x1c8   :  { %916 = vst.msk [vmem:[#allocation3 + $0x18] sm:$0xf] %vm801_vm9, %v897_v5 }
 0x1ca   :  { %v899_v7 = vpop.permute.xlu0 %898 }
 0x1cb   :  { %917 = vst.msk [vmem:[#allocation3 + $0x2c] sm:$0xf] %vm801_vm9, %v899_v7  ;;  %v901_v63 = vpop.permute.xlu1 %900 }
 0x1cc   :  { %918 = vst.msk [vmem:[#allocation3 + $0x40] sm:$0xf] %vm801_vm9, %v901_v63  ;;  %v5147_v63 = vld [vmem:[#allocation3 + $0x10] ss:$20 sps:$4 sm:$0xff]  }
 0x1ce   :  { %v785_v6 = vpop.permute.xlu0 %784  ;;  %v5102_v48 = vld [vmem:[#allocation3] ss:$20 sps:$4 sm:$0xff]  }
 0x1cf   :  { %804 = vst.msk [vmem:[#allocation3 + $0x28] sm:$0xf] %vm801_vm9, %v785_v6  ;;  %v787_v11 = vpop.permute.xlu1 %786  ;;  %v5104_v17 = vld [vmem:[#allocation3 + $0x4] ss:$20 sps:$4 sm:$0xff]  }
 0x1d0   :  { %805 = vst.msk [vmem:[#allocation3 + $0x3c] sm:$0xf] %vm801_vm9, %v787_v11  ;;  %1678 = vmatprep.mubr.bf16.mxu1 %v5104_v17  ;;  %v5148_v6 = vld [vmem:[#allocation3 + $0x38] ss:$20 sps:$4 sm:$0xff]   ;;  %v5150_v11 = vld [vmem:[#allocation3 + $0x88] ss:$0 sps:$4 sm:$0xff]  }
 0x1d1   :  { %1679 = vmatmul.mubr.bf16.vlgmr.msra.gmra.mrb[0].mxu1 %v5102_v48  ;;  %v5160_v48 = vld [vmem:[%s7236_s5 + $0x60] ss:$16 sps:$4 sm:$0xff]   ;;  %v5162_v17 = vld [vmem:[%s7236_s5 + $0x64] ss:$16 sps:$4 sm:$0xff]  }
 0x1d2   :  { %v789_v14 = vpop.permute.xlu0 %788  ;;  %4831 = vmatpush3.bf16.msra.mxu1 %v5106_v45  ;;  %v5149_v45 = vld [vmem:[#allocation3 + $0x60] ss:$20 sps:$4 sm:$0xff]   ;;  %2747 = vmatprep.subr.bf16.mxu0 %v5162_v17 }
 0x1d3   :  { %806 = vst.msk [vmem:[#allocation3 + $0x50] sm:$0xf] %vm801_vm9, %v789_v14  ;;  %v791_v52 = vpop.permute.xlu1 %790  ;;  %4832 = vmatprep.subr.bf16.mxu1 %v5107_v19  ;;  %v5110_v40 = vld [vmem:[#allocation3 + $0x2c] ss:$20 sps:$4 sm:$0xff]   ;;  %2748 = vmatpush1.bf16.msra.mxu0 %v5160_v48  ;;  %v5163_v19 = vld [vmem:[%s7236_s5 + $0x80] ss:$16 sps:$4 sm:$0xff]  }
 0x1d4   :  { %807 = vst.msk [vmem:[#allocation3 + $0x64] sm:$0xf] %vm801_vm9, %v791_v52  ;;  %1686 = vmatprep.mubr.bf16.mxu1 %v5110_v40  ;;  %v5165_v14 = vld [vmem:[%s7236_s5 + $0x84] ss:$16 sps:$4 sm:$0xff]   ;;  %v5166_v52 = vld [vmem:[%s7236_s5 + $0xa0] ss:$16 sps:$4 sm:$0xff]  }
 0x1d5   :  { %2749 = vmatprep.subr.bf16.mxu0 %v5165_v14  ;;  %v5177_v40 = vld [vmem:[%s7236_s5 + $0xe4] ss:$16 sps:$4 sm:$0xff]  }
 0x1d6   :  { %v903_v54 = vpop.permute.xlu0 %902  ;;  %v1232_v55 = vld [vmem:[#allocation3 + $0x28] sm:$0xff]  ;;  %4833 = vmatpush3.bf16.msra.mxu1 %v5108_v53 }
 0x1d7   :  { %919 = vst.msk [vmem:[#allocation3 + $0x54] sm:$0xf] %vm801_vm9, %v903_v54  ;;  %v905_v16 = vpop.permute.xlu1 %904  ;;  %v1235_v21 = vld [vmem:[#allocation3 + $0x3c] sm:$0xff]  ;;  %4834 = vmatprep.subr.bf16.mxu1 %v5112_v22  ;;  %2750 = vmatpush1.bf16.msra.mxu0 %v5163_v19  ;;  %v5169_v22 = vld [vmem:[%s7236_s5 + $0xc0] ss:$16 sps:$4 sm:$0xff]  }
 0x1d8   :  { %920 = vst.msk [vmem:[#allocation3 + $0x68] sm:$0xf] %vm801_vm9, %v905_v16  ;;  %v4374_v27 = vcombine.low %v1232_v55, %v1235_v21  ;;  %v5168_v53 = vld [vmem:[%s7236_s5 + $0xa4] ss:$16 sps:$4 sm:$0xff]   ;;  %v5172_v55 = vld [vmem:[%s7236_s5 + $0x8] ss:$16 sps:$4 sm:$0xff]  }
 0x1d9   :  { %2751 = vmatprep.subr.bf16.mxu0 %v5168_v53  ;;  %v5171_v54 = vld [vmem:[%s7236_s5 + $0xc4] ss:$16 sps:$4 sm:$0xff]   ;;  %v5174_v16 = vld [vmem:[%s7236_s5 + $0xc] ss:$16 sps:$4 sm:$0xff]   ;;  %v5175_v21 = vld [vmem:[%s7236_s5 + $0xe0] ss:$16 sps:$4 sm:$0xff]  }
 0x1da   :  { %v793_v34 = vpop.permute.xlu0 %792  ;;  %1687 = vmatmul.mubr.bf16.gmra.mrb[4].mxu1 %v4374_v27  ;;  %v5180_v27 = vld [vmem:[%s7236_s5 + $0x2c] ss:$16 sps:$4 sm:$0xff]  }
 0x1db   :  { %808 = vst.msk [vmem:[#allocation3 + $0x78] sm:$0xf] %vm801_vm9, %v793_v34  ;;  %4835 = vmatpush3.bf16.msra.mxu1 %v5114_v9  ;;  %v907_v57 = vpop.permute.xlu1 %906  ;;  %v5122_v42 = vld [vmem:[#allocation3 + $0x50] ss:$20 sps:$4 sm:$0xff]   ;;  %2752 = vmatpush1.bf16.msra.mxu0 %v5166_v52  ;;  %v5183_v34 = vld [vmem:[%s7236_s5 + $0x104] ss:$16 sps:$4 sm:$0xff]  }
 0x1dc   :  { %921 = vst.msk [vmem:[#allocation3 + $0x7c] sm:$0xf] %vm801_vm9, %v907_v57  ;;  %4836 = vmatprep.subr.bf16.mxu1 %v5115_v28  ;;  %2753 = vmatprep.subr.bf16.mxu0 %v5171_v54  ;;  %v5178_v9 = vld [vmem:[%s7236_s5 + $0x28] ss:$16 sps:$4 sm:$0xff]   ;;  %v5181_v28 = vld [vmem:[%s7236_s5 + $0x100] ss:$16 sps:$4 sm:$0xff]  }
 0x1dd   :  { %v5184_v57 = vld [vmem:[%s7236_s5 + $0x48] ss:$16 sps:$4 sm:$0xff]  }
 0x1de   :  { %v1029_v26 = vpop.permute.xlu0 %1028 }
 0x1df   :  { %1049 = vst.msk [vmem:[#allocation3 + $0x8] sm:$0xf] %vm801_vm9, %v1029_v26  ;;  %4837 = vmatpush3.bf16.msra.mxu1 %v5118_v39  ;;  %v1031_v30 = vpop.permute.xlu1 %1030  ;;  %v5120_v32 = vld [vmem:[#allocation3 + $0x54] ss:$20 sps:$4 sm:$0xff]   ;;  %2754 = vmatpush1.bf16.msra.mxu0 %v5169_v22 }
 0x1e0   :  { %1050 = vst.msk [vmem:[#allocation3 + $0x1c] sm:$0xf] %vm801_vm9, %v1031_v30  ;;  %4838 = vmatprep.subr.bf16.mxu1 %v5119_v50  ;;  %1694 = vmatprep.mubr.bf16.mxu1 %v5120_v32  ;;  %v5186_v39 = vld [vmem:[%s7236_s5 + $0x4c] ss:$16 sps:$4 sm:$0xff]   ;;  %v5187_v50 = vld [vmem:[%s7236_s5 + $0x68] ss:$16 sps:$4 sm:$0xff]  }
 0x1e1   :  { %2755 = vmatprep.subr.bf16.mxu0 %v5177_v40  ;;  %v5189_v26 = vld [vmem:[%s7236_s5 + $0x6c] ss:$16 sps:$4 sm:$0xff]   ;;  %v5192_v30 = vld [vmem:[%s7236_s5 + $0x124] ss:$16 sps:$4 sm:$0xff]   ;;  %v5193_v32 = vld [vmem:[%s7236_s5 + $0x88] ss:$16 sps:$4 sm:$0xff]  }
 0x1e2   :  { %v1139_v31 = vpop.permute.xlu0 %1138  ;;  %1695 = vmatmul.mubr.bf16.gmra.mrb[8].mxu1 %v5122_v42  ;;  %v5195_v42 = vld [vmem:[%s7236_s5 + $0x8c] ss:$16 sps:$4 sm:$0xff]  }
 0x1e3   :  { %1159 = vst.msk [vmem:[#allocation3 + $0xc] sm:$0xf] %vm801_vm9, %v1139_v31  ;;  %4839 = vmatpush3.bf16.msra.mxu1 %v5123_v46  ;;  %v1141_v51 = vpop.permute.xlu1 %1140  ;;  %v1244_v29 = vld [vmem:[#allocation3 + $0x78] sm:$0xff]  ;;  %2756 = vmatpush1.bf16.msra.mxu0 %v5175_v21  ;;  %v5198_v31 = vld [vmem:[%s7236_s5 + $0xac] ss:$16 sps:$4 sm:$0xff]  }
 0x1e4   :  { %1160 = vst.msk [vmem:[#allocation3 + $0x20] sm:$0xf] %vm801_vm9, %v1141_v51  ;;  %4840 = vmatprep.subr.bf16.mxu1 %v5124_v13  ;;  %v4385_v33 = vcombine.high %v1244_v29, %v1244_v29  ;;  %v4384_v47 = vcombine.low %v1244_v29, %v1244_v29  ;;  %2757 = vmatprep.subr.bf16.mxu0 %v5183_v34  ;;  %v5190_v46 = vld [vmem:[%s7236_s5 + $0x120] ss:$16 sps:$4 sm:$0xff]   ;;  %v5196_v13 = vld [vmem:[%s7236_s5 + $0xa8] ss:$16 sps:$4 sm:$0xff]  }
 0x1e5   :  { %v5199_v51 = vld [vmem:[%s7236_s5 + $0x140] ss:$16 sps:$4 sm:$0xff]   ;;  %v5201_v29 = vld [vmem:[%s7236_s5 + $0x144] ss:$16 sps:$4 sm:$0xff]  }
 0x1e6   :  { %v1033_v35 = vpop.permute.xlu0 %1032  ;;  %1702 = vmatprep.mubr.bf16.mxu1 %v4385_v33  ;;  %v5204_v33 = vld [vmem:[%s7236_s5 + $0xcc] ss:$16 sps:$4 sm:$0xff]  }
 0x1e7   :  { %1051 = vst.msk [vmem:[#allocation3 + $0x30] sm:$0xf] %vm801_vm9, %v1033_v35  ;;  %4841 = vmatpush3.bf16.msra.mxu1 %v5126_v56  ;;  %v1035_v44 = vpop.permute.xlu1 %1034  ;;  %v5130_v38 = vld [vmem:[#allocation3 + $0x8] ss:$20 sps:$4 sm:$0xff]   ;;  %2758 = vmatpush1.bf16.msra.mxu0 %v5181_v28  ;;  %v5202_v56 = vld [vmem:[%s7236_s5 + $0xc8] ss:$16 sps:$4 sm:$0xff]  }
 0x1e8   :  { %1052 = vst.msk [vmem:[#allocation3 + $0x44] sm:$0xf] %vm801_vm9, %v1035_v44  ;;  %4842 = vmatprep.subr.bf16.mxu1 %v5127_v1  ;;  %2759 = vmatprep.subr.bf16.mxu0 %v5192_v30  ;;  %v5205_v1 = vld [vmem:[%s7236_s5 + $0xe8] ss:$16 sps:$4 sm:$0xff]   ;;  %v5207_v35 = vld [vmem:[%s7236_s5 + $0xec] ss:$16 sps:$4 sm:$0xff]  }
 0x1e9   :  { %v5208_v44 = vld [vmem:[%s7236_s5 + $0x160] ss:$16 sps:$4 sm:$0xff]  }
 0x1ea   :  { %v1143_v23 = vpop.permute.xlu0 %1142  ;;  %1703 = vmatmul.mubr.bf16.gmra.mrb[12].mxu1 %v4384_v47  ;;  %v5213_v47 = vld [vmem:[%s7236_s5 + $0x10c] ss:$16 sps:$4 sm:$0xff]  }
 0x1eb   :  { %1161 = vst.msk [vmem:[#allocation3 + $0x34] sm:$0xf] %vm801_vm9, %v1143_v23  ;;  %4843 = vmatpush3.bf16.msra.mxu1 %v5128_v18  ;;  %v1145_v41 = vpop.permute.xlu1 %1144  ;;  %v5132_v0 = vld [vmem:[#allocation3 + $0xc] ss:$20 sps:$4 sm:$0xff]   ;;  %2760 = vmatpush1.bf16.msra.mxu0 %v5190_v46  ;;  %v5214_v23 = vld [vmem:[%s7236_s5 + $0x180] ss:$16 sps:$4 sm:$0xff]  }
 0x1ec   :  { %1162 = vst.msk [vmem:[#allocation3 + $0x48] sm:$0xf] %vm801_vm9, %v1145_v41  ;;  %4844 = vmatprep.subr.bf16.mxu1 %v5129_v49  ;;  %1742 = vmatprep.mubr.bf16.mxu1 %v5132_v0  ;;  %v5210_v18 = vld [vmem:[%s7236_s5 + $0x164] ss:$16 sps:$4 sm:$0xff]   ;;  %v5211_v49 = vld [vmem:[%s7236_s5 + $0x108] ss:$16 sps:$4 sm:$0xff]  }
 0x1ed   :  { %2761 = vmatprep.subr.bf16.mxu0 %v5201_v29  ;;  %v5216_v41 = vld [vmem:[%s7236_s5 + $0x184] ss:$16 sps:$4 sm:$0xff]   ;;  %v5217_v0 = vld [vmem:[%s7236_s5 + $0x128] ss:$16 sps:$4 sm:$0xff]  }
 0x1ee   :  { %v1037_v58 = vpop.permute.xlu0 %1036 }
 0x1ef   :  { %1053 = vst.msk [vmem:[#allocation3 + $0x58] sm:$0xf] %vm801_vm9, %v1037_v58  ;;  %4845 = vmatpush3.bf16.msra.mxu1 %v5133_v12  ;;  %v1039_v36 = vpop.permute.xlu1 %1038  ;;  %2762 = vmatpush1.bf16.msra.mxu0 %v5199_v51  ;;  %v5219_v12 = vld [vmem:[%s7236_s5 + $0x12c] ss:$16 sps:$4 sm:$0xff]   ;;  %v5220_v58 = vld [vmem:[%s7236_s5 + $0x148] ss:$16 sps:$4 sm:$0xff]  }
 0x1f0   :  { %1054 = vst.msk [vmem:[#allocation3 + $0x6c] sm:$0xf] %vm801_vm9, %v1039_v36  ;;  %4984 = vmatprep.subr.bf16.mxu1 %v5135_v25  ;;  %2763 = vmatprep.subr.bf16.mxu0 %v5210_v18  ;;  %v5223_v36 = vld [vmem:[%s7236_s5 + $0x1a0] ss:$16 sps:$4 sm:$0xff]  }
 0x1f2   :  { %v1147_v20 = vpop.permute.xlu0 %1146  ;;  %1743 = vmatmul.mubr.bf16.vlgmr.msra.gmra.mrb[16].mxu1 %v5130_v38  ;;  %v1233_v4 = vld [vmem:[#allocation3 + $0x30] sm:$0xff]  ;;  %v5225_v38 = vld [vmem:[%s7236_s5 + $0x1a4] ss:$16 sps:$4 sm:$0xff]  }
 0x1f3   :  { %1163 = vst.msk [vmem:[#allocation3 + $0x5c] sm:$0xf] %vm801_vm9, %v1147_v20  ;;  %4985 = vmatpush3.bf16.msra.mxu1 %v5135_v25  ;;  %v1149_v61 = vpop.permute.xlu1 %1148  ;;  %v5136_v43 = vld [vmem:[#allocation3 + $0x34] ss:$20 sps:$4 sm:$0xff]   ;;  %2764 = vmatpush1.bf16.msra.mxu0 %v5208_v44  ;;  %v5226_v20 = vld [vmem:[%s7236_s5 + $0x168] ss:$16 sps:$4 sm:$0xff]  }
 0x1f4   :  { %1164 = vst.msk [vmem:[#allocation3 + $0x70] sm:$0xf] %vm801_vm9, %v1149_v61  ;;  %4986 = vmatprep.subr.bf16.mxu1 %v5139_v15  ;;  %v1236_v59 = vld [vmem:[#allocation3 + $0x44] sm:$0xff]  ;;  %1750 = vmatprep.mubr.bf16.mxu1 %v5136_v43 }
 0x1f5   :  { %v4376_v60 = vcombine.low %v1233_v4, %v1236_v59  ;;  %v5222_v25 = vld [vmem:[%s7236_s5 + $0x14c] ss:$16 sps:$4 sm:$0xff]   ;;  %2765 = vmatprep.subr.bf16.mxu0 %v5216_v41  ;;  %v5232_v43 = vld [vmem:[%s7236_s5 + $0x1c0] ss:$16 sps:$4 sm:$0xff]   ;;  %v5229_v4 = vld [vmem:[%s7236_s5 + $0x188] ss:$16 sps:$4 sm:$0xff]  }
 0x1f6   :  { %v1041_v8 = vpop.permute.xlu0 %1040  ;;  %v5231_v61 = vld [vmem:[%s7236_s5 + $0x18c] ss:$16 sps:$4 sm:$0xff]   ;;  %v5243_v59 = vld [vmem:[%s7236_s5 + $0x1e4] ss:$16 sps:$4 sm:$0xff]  }
 0x1f7   :  { %1055 = vst.msk [vmem:[#allocation3 + $0x80] sm:$0xf] %vm801_vm9, %v1041_v8  ;;  %v1151_v2 = vpop.permute.xlu1 %1150  ;;  %4987 = vmatpush3.bf16.msra.mxu1 %v5139_v15  ;;  %v5143_v62 = vld [vmem:[#allocation3 + $0x58] ss:$20 sps:$4 sm:$0xff]   ;;  %2766 = vmatpush1.bf16.msra.mxu0 %v5214_v23  ;;  %v5228_v15 = vld [vmem:[%s7236_s5 + $0x16c] ss:$16 sps:$4 sm:$0xff]  }
 0x1f8   :  { %1165 = vst.msk [vmem:[#allocation3 + $0x84] sm:$0xf] %vm801_vm9, %v1151_v2  ;;  %4988 = vmatprep.subr.bf16.mxu1 %v5142_v3  ;;  %2767 = vmatprep.subr.bf16.mxu0 %v5225_v38  ;;  %v5237_v8 = vld [vmem:[%s7236_s5 + $0x1ac] ss:$16 sps:$4 sm:$0xff]   ;;  %v5241_v2 = vld [vmem:[%s7236_s5 + $0x1e0] ss:$16 sps:$4 sm:$0xff]  }
 0x1fa   :  { %1751 = vmatmul.mubr.bf16.gmra.mrb[20].mxu1 %v4376_v60  ;;  %v5235_v60 = vld [vmem:[%s7236_s5 + $0x1a8] ss:$16 sps:$4 sm:$0xff]  }
 0x1fb   :  { %v5140_v10 = vld [vmem:[#allocation3 + $0x5c] ss:$20 sps:$4 sm:$0xff]   ;;  %4989 = vmatpush3.bf16.msra.mxu1 %v5142_v3  ;;  %2768 = vmatpush1.bf16.msra.mxu0 %v5223_v36 }
 0x1fc   :  { %4990 = vmatprep.subr.bf16.mxu1 %v5145_v37  ;;  %1758 = vmatprep.mubr.bf16.mxu1 %v5140_v10  ;;  %v5234_v3 = vld [vmem:[%s7236_s5 + $0x1c4] ss:$16 sps:$4 sm:$0xff]   ;;  %v5238_v10 = vld [vmem:[%s7236_s5 + $0x1c8] ss:$16 sps:$4 sm:$0xff]  }
 0x1fd   :  { %2769 = vmatprep.subr.bf16.mxu0 %v5234_v3 }
 0x1ff   :  { %v1245_v24 = vld [vmem:[#allocation3 + $0x80] sm:$0xff]  ;;  %4991 = vmatpush3.bf16.msra.mxu1 %v5145_v37  ;;  %2770 = vmatpush1.bf16.msra.mxu0 %v5232_v43 }
 0x200   :  { %v4387_v5 = vcombine.high %v1245_v24, %v1245_v24  ;;  %v4386_v7 = vcombine.low %v1245_v24, %v1245_v24  ;;  %2823 = vmatprep.subr.bf16.mxu1 %v5174_v16  ;;  %2771 = vmatprep.subr.bf16.mxu0 %v5243_v59  ;;  %v5240_v37 = vld [vmem:[%s7236_s5 + $0x1cc] ss:$16 sps:$4 sm:$0xff]  }
 0x201   :  { %v5246_v24 = vld [vmem:[%s7236_s5 + $0x1ec] ss:$16 sps:$4 sm:$0xff]  }
 0x202   :  { %1759 = vmatmul.mubr.bf16.gmra.mrb[24].mxu1 %v5143_v62  ;;  %v5249_v62 = vld [vmem:[%s7236_s5 + $0x204] ss:$16 sps:$4 sm:$0xff]  }
 0x203   :  { %1766 = vmatprep.mubr.bf16.mxu1 %v4387_v5  ;;  %2772 = vmatpush1.bf16.msra.mxu0 %v5241_v2  ;;  %v5244_v5 = vld [vmem:[%s7236_s5 + $0x1e8] ss:$16 sps:$4 sm:$0xff]  }
 0x204   :  { %2782 = vmatprep.subr.bf16.mxu0 %v5249_v62 }
 0x20a   :  { %1767 = vmatmul.mubr.bf16.gmra.mrb[28].mxu1 %v4386_v7  ;;  %v5252_v7 = vld [vmem:[%s7236_s5 + $0x20c] ss:$16 sps:$4 sm:$0xff]  }
 0x20b   :  { %4992 = vmatprep.mubr.msk.bf16.mxu1 %vm686_vm2, %v5147_v63 }
 0x212   :  { %4993 = vmatmul.mubr.msk.bf16.vlgmr.msra.gmra.mrb[32].mxu1 %vm686_vm2, %v5148_v6 }
 0x213   :  { %4996 = vmatprep.mubr.msk.bf16.mxu1 %vm686_vm2, %v5149_v45  ;;  %2824 = vmatpush1.bf16.msra.mxu1 %v5172_v55 }
 0x214   :  { %2825 = vmatprep.subr.bf16.mxu1 %v5180_v27 }
 0x217   :  { %2826 = vmatpush1.bf16.msra.mxu1 %v5178_v9 }
 0x218   :  { %2827 = vmatprep.subr.bf16.mxu1 %v5186_v39 }
 0x21a   :  { %4997 = vmatmul.mubr.msk.bf16.gmra.mrb[36].mxu1 %vm686_vm2, %v5150_v11 }
 0x21b   :  { %2828 = vmatpush1.bf16.msra.mxu1 %v5184_v57 }
 0x21c   :  { %2829 = vmatprep.subr.bf16.mxu1 %v5189_v26  ;;  %v4368_v26 = vld [vmem:[%s7235_s4] ss:$0 sm:$0xff] }
 0x21f   :  { %2830 = vmatpush1.bf16.msra.mxu1 %v5187_v50 }
 0x220   :  { %2831 = vmatprep.subr.bf16.mxu1 %v5195_v42 }
 0x223   :  { %2832 = vmatpush1.bf16.msra.mxu1 %v5193_v32 }
 0x224   :  { %2833 = vmatprep.subr.bf16.mxu1 %v5198_v31 }
 0x227   :  { %2834 = vmatpush1.bf16.msra.mxu1 %v5196_v13 }
 0x228   :  { %2835 = vmatprep.subr.bf16.mxu1 %v5204_v33 }
 0x22b   :  { %2836 = vmatpush1.bf16.msra.mxu1 %v5202_v56 }
 0x22c   :  { %2837 = vmatprep.subr.bf16.mxu1 %v5207_v35 }
 0x22f   :  { %2838 = vmatpush1.bf16.msra.mxu1 %v5205_v1 }
 0x230   :  { %2839 = vmatprep.subr.bf16.mxu1 %v5213_v47 }
 0x233   :  { %2840 = vmatpush1.bf16.msra.mxu1 %v5211_v49 }
 0x234   :  { %2841 = vmatprep.subr.bf16.mxu1 %v5219_v12 }
 0x237   :  { %2842 = vmatpush1.bf16.msra.mxu1 %v5217_v0 }
 0x238   :  { %2843 = vmatprep.subr.bf16.mxu1 %v5222_v25 }
 0x23b   :  { %2844 = vmatpush1.bf16.msra.mxu1 %v5220_v58 }
 0x23c   :  { %2845 = vmatprep.subr.bf16.mxu1 %v5228_v15 }
 0x23f   :  { %2846 = vmatpush1.bf16.msra.mxu1 %v5226_v20 }
 0x240   :  { %2847 = vmatprep.subr.bf16.mxu1 %v5231_v61 }
 0x243   :  { %2848 = vmatpush1.bf16.msra.mxu1 %v5229_v4 }
 0x244   :  { %2849 = vmatprep.subr.bf16.mxu1 %v5237_v8 }
 0x247   :  { %2850 = vmatpush1.bf16.msra.mxu1 %v5235_v60 }
 0x248   :  { %2851 = vmatprep.subr.bf16.mxu1 %v5240_v37 }
 0x24b   :  { %2852 = vmatpush1.bf16.msra.mxu1 %v5238_v10 }
 0x24c   :  { %2853 = vmatprep.subr.bf16.mxu1 %v5246_v24 }
 0x24f   :  { %2854 = vmatpush1.bf16.msra.mxu1 %v5244_v5 }
 0x250   :  { %2864 = vmatprep.subr.bf16.mxu1 %v5252_v7 }
 0x2a4   :  { %v4806_v63 = vpop.f32.mrb[0].mxu1 }
 0x2a5   :  { %v4807_v6 = vpop.f32.mrb[1].mxu1 }
 0x2a6   :  { %v4808_v45 = vadd.f32 %v4807_v6, %v4806_v63  ;;  %v4809_v11 = vpop.f32.mrb[2].mxu1 }
 0x2a7   :  { %v4810_v48 = vpop.f32.mrb[3].mxu1 }
 0x2a8   :  { %v4811_v17 = vadd.f32 %v4810_v48, %v4809_v11  ;;  %v1681_v32 = vadd.f32 %v4808_v45, %v4368_v26 }
 0x2aa   :  { %v1684_v51 = vadd.f32 %v4811_v17, %v4368_v26 }
 0x2ad   :  { %v4812_v19 = vpop.f32.mrb[4].mxu1 }
 0x2ae   :  { %v4813_v14 = vpop.f32.mrb[5].mxu1 }
 0x2af   :  { %v4814_v52 = vadd.f32 %v4813_v14, %v4812_v19  ;;  %v4815_v53 = vpop.f32.mrb[6].mxu1 }
 0x2b0   :  { %v4816_v22 = vpop.f32.mrb[7].mxu1 }
 0x2b1   :  { %v4817_v54 = vadd.f32 %v4816_v22, %v4815_v53  ;;  %v1689_v44 = vadd.f32 %v4814_v52, %v4368_v26 }
 0x2b3   :  { %v1692_v23 = vadd.f32 %v4817_v54, %v4368_v26 }
 0x2b5   :  { %v4818_v55 = vpop.f32.mrb[8].mxu1 }
 0x2b6   :  { %v4819_v16 = vpop.f32.mrb[9].mxu1 }
 0x2b7   :  { %v4820_v21 = vadd.f32 %v4819_v16, %v4818_v55  ;;  %v4821_v40 = vpop.f32.mrb[10].mxu1 }
 0x2b8   :  { %v4822_v9 = vpop.f32.mrb[11].mxu1 }
 0x2b9   :  { %v4823_v27 = vadd.f32 %v4822_v9, %v4821_v40  ;;  %v1697_v36 = vadd.f32 %v4820_v21, %v4368_v26 }
 0x2bb   :  { %v1700_v61 = vadd.f32 %v4823_v27, %v4368_v26 }
 0x2bd   :  { %v4824_v28 = vpop.f32.mrb[12].mxu1 }
 0x2be   :  { %v4825_v34 = vpop.f32.mrb[13].mxu1 }
 0x2bf   :  { %v4826_v57 = vadd.f32 %v4825_v34, %v4824_v28  ;;  %v4827_v39 = vpop.f32.mrb[14].mxu1 }
 0x2c0   :  { %v4828_v50 = vpop.f32.mrb[15].mxu1 }
 0x2c1   :  { %v1705_v2 = vadd.f32 %v4826_v57, %v4368_v26 }
 0x2c5   :  { %v4846_v46 = vpop.f32.mrb[16].mxu1 }
 0x2c6   :  { %v4847_v30 = vpop.f32.mrb[17].mxu1 }
 0x2c7   :  { %v4848_v42 = vadd.f32 %v4847_v30, %v4846_v46  ;;  %v4849_v13 = vpop.f32.mrb[18].mxu1 }
 0x2c8   :  { %v4850_v31 = vpop.f32.mrb[19].mxu1 }
 0x2c9   :  { %v4851_v29 = vadd.f32 %v4850_v31, %v4849_v13  ;;  %v1745_v56 = vadd.f32 %v4848_v42, %v1681_v32 }
 0x2cb   :  { %v1748_v33 = vadd.f32 %v4851_v29, %v1684_v51 }
 0x2cd   :  { %v4852_v1 = vpop.f32.mrb[20].mxu1 }
 0x2ce   :  { %v4853_v35 = vpop.f32.mrb[21].mxu1 }
 0x2cf   :  { %v4854_v18 = vadd.f32 %v4853_v35, %v4852_v1  ;;  %v4855_v47 = vpop.f32.mrb[22].mxu1 }
 0x2d0   :  { %v4856_v49 = vpop.f32.mrb[23].mxu1 }
 0x2d1   :  { %v4857_v41 = vadd.f32 %v4856_v49, %v4855_v47  ;;  %v1753_v0 = vadd.f32 %v4854_v18, %v1689_v44 }
 0x2d3   :  { %v1756_v12 = vadd.f32 %v4857_v41, %v1692_v23 }
 0x2d5   :  { %v4858_v25 = vpop.f32.mrb[24].mxu1 }
 0x2d6   :  { %v4859_v58 = vpop.f32.mrb[25].mxu1 }
 0x2d7   :  { %v4860_v38 = vadd.f32 %v4859_v58, %v4858_v25  ;;  %v4861_v15 = vpop.f32.mrb[26].mxu1 }
 0x2d8   :  { %v4862_v20 = vpop.f32.mrb[27].mxu1 }
 0x2d9   :  { %v4863_v43 = vadd.f32 %v4862_v20, %v4861_v15  ;;  %v1761_v3 = vadd.f32 %v4860_v38, %v1697_v36  ;;  %v5247_v36 = vld [vmem:[%s7236_s5 + $0x200] ss:$16 sps:$4 sm:$0xff]   ;;  %v5250_v38 = vld [vmem:[%s7236_s5 + $0x208] ss:$16 sps:$4 sm:$0xff]  }
 0x2db   :  { %v1764_v4 = vadd.f32 %v4863_v43, %v1700_v61  ;;  %v5255_v61 = vld [vmem:[%s7236_s5 + $0x224] ss:$16 sps:$4 sm:$0xff]   ;;  %v5258_v43 = vld [vmem:[%s7236_s5 + $0x22c] ss:$16 sps:$4 sm:$0xff]  }
 0x2dd   :  { %v4864_v59 = vpop.f32.mrb[28].mxu1 }
 0x2de   :  { %v4865_v8 = vpop.f32.mrb[29].mxu1 }
 0x2df   :  { %v4866_v60 = vadd.f32 %v4865_v8, %v4864_v59  ;;  %v4867_v37 = vpop.f32.mrb[30].mxu1  ;;  %v5253_v8 = vld [vmem:[%s7236_s5 + $0x220] ss:$16 sps:$4 sm:$0xff]  }
 0x2e0   :  { %v4868_v10 = vpop.f32.mrb[31].mxu1  ;;  %v5261_v37 = vld [vmem:[%s7236_s5 + $0x244] ss:$16 sps:$4 sm:$0xff]  }
 0x2e1   :  { %v1769_v24 = vadd.f32 %v4866_v60, %v1705_v2  ;;  %v5256_v2 = vld [vmem:[%s7236_s5 + $0x228] ss:$16 sps:$4 sm:$0xff]   ;;  %v5264_v10 = vld [vmem:[%s7236_s5 + $0x24c] ss:$16 sps:$4 sm:$0xff]  }
 0x2e5   :  { %v4994_v62 = vpop.f32.mrb[32].mxu1 }
 0x2e6   :  { %v1817_v5 = vadd.f32 %v4994_v62, %v1753_v0  ;;  %v1808_v7 = vpop.f32.mrb[33].mxu1  ;;  %v5259_v62 = vld [vmem:[%s7236_s5 + $0x240] ss:$16 sps:$4 sm:$0xff]  }
 0x2e7   :  { %v1809_v63 = vadd.f32 %v1808_v7, %v1745_v56  ;;  %v4995_v6 = vpop.f32.mrb[34].mxu1  ;;  %v5262_v7 = vld [vmem:[%s7236_s5 + $0x248] ss:$16 sps:$4 sm:$0xff]  }
 0x2e8   :  { %v1820_v45 = vadd.f32 %v4995_v6, %v1756_v12  ;;  %v1811_v11 = vpop.f32.mrb[35].mxu1  ;;  %v1840_v17 = vmax.f32 %v1817_v5, 0.0  ;;  %v5270_v6 = vld [vmem:[%s7236_s5 + $0x26c] ss:$16 sps:$4 sm:$0xff]  }
 0x2e9   :  { %v1812_v48 = vadd.f32 %v1811_v11, %v1748_v33  ;;  %v1838_v14 = vmax.f32 %v1809_v63, 0.0  ;;  %v5267_v63 = vld [vmem:[%s7236_s5 + $0x264] ss:$16 sps:$4 sm:$0xff]   ;;  %v5268_v11 = vld [vmem:[%s7236_s5 + $0x268] ss:$16 sps:$4 sm:$0xff]  }
 0x2ea   :  { %v1841_v19 = vmax.f32 %v1820_v45, 0.0  ;;  %v5265_v45 = vld [vmem:[%s7236_s5 + $0x260] ss:$16 sps:$4 sm:$0xff]  }
 0x2eb   :  { %v1839_v52 = vmax.f32 %v1812_v48, 0.0  ;;  %v5273_v48 = vld [vmem:[%s7236_s5 + $0x284] ss:$16 sps:$4 sm:$0xff]  }
 0x2ec   :  { %v4750_v53 = vpack.c.bf16 %v1841_v19, %v1840_v17  ;;  %v5276_v17 = vld [vmem:[%s7236_s5 + $0x28c] ss:$16 sps:$4 sm:$0xff]   ;;  %v5271_v19 = vld [vmem:[%s7236_s5 + $0x280] ss:$16 sps:$4 sm:$0xff]  }
 0x2ed   :  { %v4745_v22 = vpack.c.bf16 %v1839_v52, %v1838_v14  ;;  %v4998_v54 = vpop.f32.mrb[36].mxu1  ;;  %v5274_v14 = vld [vmem:[%s7236_s5 + $0x288] ss:$16 sps:$4 sm:$0xff]   ;;  %v5279_v52 = vld [vmem:[%s7236_s5 + $0x2a4] ss:$16 sps:$4 sm:$0xff]  }
 0x2ee   :  { %4757 = vst [vmem:[#allocation4 + $0x8] sm:$0xff] %v4750_v53   ;;  %v1833_v55 = vadd.f32 %v4998_v54, %v1769_v24  ;;  %v1824_v16 = vpop.f32.mrb[37].mxu1  ;;  %v5282_v53 = vld [vmem:[%s7236_s5 + $0x2ac] ss:$16 sps:$4 sm:$0xff]   ;;  %v5280_v54 = vld [vmem:[%s7236_s5 + $0x2a8] ss:$16 sps:$4 sm:$0xff]  }
 0x2ef   :  { %4746 = vst [vmem:[#allocation4] sm:$0xff] %v4745_v22   ;;  %v1825_v21 = vadd.f32 %v1824_v16, %v1761_v3  ;;  %v4999_v40 = vpop.f32.mrb[38].mxu1  ;;  %v5277_v22 = vld [vmem:[%s7236_s5 + $0x2a0] ss:$16 sps:$4 sm:$0xff]   ;;  %v5288_v16 = vld [vmem:[%s7236_s5 + $0x2cc] ss:$16 sps:$4 sm:$0xff]  }
 0x2f0   :  { %v1844_v9 = vmax.f32 %v1833_v55, 0.0  ;;  %v1827_v27 = vpop.f32.mrb[39].mxu1  ;;  %v5285_v55 = vld [vmem:[%s7236_s5 + $0x2c4] ss:$16 sps:$4 sm:$0xff]   ;;  %v5286_v40 = vld [vmem:[%s7236_s5 + $0x2c8] ss:$16 sps:$4 sm:$0xff]  }
 0x2f1   :  { %v1828_v28 = vadd.f32 %v1827_v27, %v1764_v4  ;;  %v1842_v57 = vmax.f32 %v1825_v21, 0.0  ;;  %v5283_v21 = vld [vmem:[%s7236_s5 + $0x2c0] ss:$16 sps:$4 sm:$0xff]   ;;  %v5294_v27 = vld [vmem:[%s7236_s5 + $0x2ec] ss:$16 sps:$4 sm:$0xff]  }
 0x2f2   :  { %v4741_v34 = vpack.c.bf16 %v1844_v9, %v1844_v9  ;;  %v5291_v9 = vld [vmem:[%s7236_s5 + $0x2e4] ss:$16 sps:$4 sm:$0xff]  }
 0x2f3   :  { %v1843_v39 = vmax.f32 %v1828_v28, 0.0  ;;  %v5289_v28 = vld [vmem:[%s7236_s5 + $0x2e0] ss:$16 sps:$4 sm:$0xff]  }
 0x2f4   :  { %1880 = vst [vmem:[#allocation4 + $0x18] sm:$0xf] %v4741_v34  ;;  %v5292_v34 = vld [vmem:[%s7236_s5 + $0x2e8] ss:$16 sps:$4 sm:$0xff]  }
 0x2f5   :  { %v4755_v50 = vpack.c.bf16 %v1843_v39, %v1842_v57  ;;  %v1905_v42 = vld [vmem:[#allocation4 + $0x8] sm:$0x8]  ;;  %v1903_v29 = vld [vmem:[#allocation4 + $0x8] sm:$0x4]  ;;  %v1888_v44 = vld [vmem:[#allocation4 + $0x8] sm:$0x1] }
 0x2f6   :  { %v1897_v26 = vld [vmem:[#allocation4] sm:$0x8]  ;;  %v1882_v30 = vld [vmem:[#allocation4] sm:$0x2]  ;;  %v1896_v32 = vld [vmem:[#allocation4] sm:$0x4] }
 0x2f7   :  { %4758 = vst [vmem:[#allocation4 + $0x10] sm:$0xff] %v4755_v50   ;;  %v4438_v46 = vrot.slane %v1897_v26, 9  ;;  %v4436_v13 = vrot.slane %v1882_v30, 9  ;;  %v1881_v51 = vld [vmem:[#allocation4] sm:$0x1]  ;;  %v4439_v1 = vrot.slane %v1905_v42, 9 }
 0x2f8   :  { %v1890_v18 = vld [vmem:[#allocation4 + $0x8] sm:$0x2]  ;;  %v5297_v57 = vld [vmem:[%s7236_s5 + $0x304] ss:$16 sps:$4 sm:$0xff]   ;;  %v5295_v50 = vld [vmem:[%s7236_s5 + $0x300] ss:$16 sps:$4 sm:$0xff]  }
 0x2f9   :  { %v1902_v31 = vmax.bf16 %v4438_v46, %v1896_v32  ;;  %v1887_v56 = vmax.bf16 %v4436_v13, %v1881_v51  ;;  %v4437_v0 = vrot.slane %v1890_v18, 9  ;;  %v5300_v39 = vld [vmem:[%s7236_s5 + $0x30c] ss:$16 sps:$4 sm:$0xff]   ;;  %v5298_v26 = vld [vmem:[%s7236_s5 + $0x308] ss:$16 sps:$4 sm:$0xff]  }
 0x2fa   :  { %v5303_v46 = vld [vmem:[%s7236_s5 + $0x324] ss:$16 sps:$4 sm:$0xff]   ;;  %v5306_v30 = vld [vmem:[%s7236_s5 + $0x32c] ss:$16 sps:$4 sm:$0xff]   ;;  %v5301_v32 = vld [vmem:[%s7236_s5 + $0x320] ss:$16 sps:$4 sm:$0xff]  }
 0x2fb   :  { %v1904_v33 = vmax.bf16 %v1903_v29, %v1902_v31  ;;  %v1889_v47 = vmax.bf16 %v1888_v44, %v1887_v56  ;;  %v1935_v25 = vld [vmem:[#allocation4 + $0x18] sm:$0x8]  ;;  %v1933_v3 = vld [vmem:[#allocation4 + $0x18] sm:$0x4]  ;;  %v5304_v42 = vld [vmem:[%s7236_s5 + $0x328] ss:$16 sps:$4 sm:$0xff]  }
 0x2fc   :  { %v4443_v59 = vrot.slane %v1935_v25, 9  ;;  %v5309_v13 = vld [vmem:[%s7236_s5 + $0x344] ss:$16 sps:$4 sm:$0xff]   ;;  %v5312_v31 = vld [vmem:[%s7236_s5 + $0x34c] ss:$16 sps:$4 sm:$0xff]  }
 0x2fd   :  { %v1910_v35 = vmax.bf16 %v4439_v1, %v1904_v33  ;;  %v1895_v20 = vmax.bf16 %v4437_v0, %v1889_v47  ;;  %v5307_v51 = vld [vmem:[%s7236_s5 + $0x340] ss:$16 sps:$4 sm:$0xff]   ;;  %v5310_v29 = vld [vmem:[%s7236_s5 + $0x348] ss:$16 sps:$4 sm:$0xff]   ;;  %v5315_v56 = vld [vmem:[%s7236_s5 + $0x364] ss:$16 sps:$4 sm:$0xff]  }
 0x2fe   :  { %v1927_v49 = vld [vmem:[#allocation4 + $0x10] sm:$0x8]  ;;  %v1926_v12 = vld [vmem:[#allocation4 + $0x10] sm:$0x4]  ;;  %v5318_v33 = vld [vmem:[%s7236_s5 + $0x36c] ss:$16 sps:$4 sm:$0xff]  }
 0x2ff   :  { %v4444_v23 = vcombine.low %v1910_v35, %v1910_v35  ;;  %v4442_v41 = vrot.slane %v1927_v49, 9  ;;  %v5313_v1 = vld [vmem:[%s7236_s5 + $0x360] ss:$16 sps:$4 sm:$0xff]   ;;  %v5316_v35 = vld [vmem:[%s7236_s5 + $0x368] ss:$16 sps:$4 sm:$0xff]  }
 0x300   :  { %v5321_v44 = vld [vmem:[%s7236_s5 + $0x384] ss:$16 sps:$4 sm:$0xff]   ;;  %v5324_v18 = vld [vmem:[%s7236_s5 + $0x38c] ss:$16 sps:$4 sm:$0xff]   ;;  %v5319_v47 = vld [vmem:[%s7236_s5 + $0x380] ss:$16 sps:$4 sm:$0xff]  }
 0x301   :  { %v1944_v58 = vrot.slane %v4444_v23, 2  ;;  %v1932_v15 = vmax.bf16 %v4442_v41, %v1926_v12  ;;  %v5322_v49 = vld [vmem:[%s7236_s5 + $0x388] ss:$16 sps:$4 sm:$0xff]   ;;  %v5327_v23 = vld [vmem:[%s7236_s5 + $0x3a4] ss:$16 sps:$4 sm:$0xff]  }
 0x302   :  { %v5330_v41 = vld [vmem:[%s7236_s5 + $0x3ac] ss:$16 sps:$4 sm:$0xff]   ;;  %v1912_v0 = vld [vmem:[#allocation4 + $0x10] sm:$0x2]  ;;  %v5325_v12 = vld [vmem:[%s7236_s5 + $0x3a0] ss:$16 sps:$4 sm:$0xff]  }
 0x303   :  { %2773 = vmatprep.mubr.bf16.mxu0 %v1944_v58  ;;  %2855 = vmatprep.mubr.bf16.mxu1 %v1944_v58  ;;  %v1934_v4 = vmax.bf16 %v1933_v3, %v1932_v15  ;;  %v5328_v25 = vld [vmem:[%s7236_s5 + $0x3a8] ss:$16 sps:$4 sm:$0xff]   ;;  %v5333_v58 = vld [vmem:[%s7236_s5 + $0x3c4] ss:$16 sps:$4 sm:$0xff]   ;;  %v5331_v15 = vld [vmem:[%s7236_s5 + $0x3c0] ss:$16 sps:$4 sm:$0xff]  }
 0x304   :  { %2774 = vmatmul.mubr.bf16.vlgmr.msra.gmra.mrb[56].mxu0 %v1895_v20  ;;  %2856 = vmatmul.mubr.bf16.vlgmr.msra.gmra.mrb[40].mxu1 %v1895_v20  ;;  %v5334_v20 = vld [vmem:[%s7236_s5 + $0x3c8] ss:$16 sps:$4 sm:$0xff]   ;;  %v5342_v3 = vld [vmem:[%s7236_s5 + $0x3ec] ss:$16 sps:$4 sm:$0xff]  }
 0x305   :  { %2783 = vmatpush1.bf16.msra.mxu0 %v5247_v36  ;;  %2865 = vmatpush1.bf16.msra.mxu1 %v5250_v38  ;;  %v1940_v60 = vmax.bf16 %v4443_v59, %v1934_v4  ;;  %v5336_v36 = vld [vmem:[%s7236_s5 + $0x3cc] ss:$16 sps:$4 sm:$0xff]   ;;  %v4440_v38 = vrot.slane %v1912_v0, 9  ;;  %v5337_v59 = vld [vmem:[%s7236_s5 + $0x3e0] ss:$16 sps:$4 sm:$0xff]  }
 0x306   :  { %2784 = vmatprep.subr.bf16.mxu0 %v5255_v61  ;;  %2866 = vmatprep.subr.bf16.mxu1 %v5258_v43  ;;  %v1911_v61 = vld [vmem:[#allocation4 + $0x10] sm:$0x1]  ;;  %v5414_v0 = vld [vmem:[%s7238_s7 + $0x16c] ss:$16 sps:$4 sm:$0xff]  }
 0x307   :  { %v4445_v24 = vcombine.low %v1940_v60, %v1940_v60  ;;  %v5339_v43 = vld [vmem:[%s7236_s5 + $0x3e4] ss:$16 sps:$4 sm:$0xff]   ;;  %v1917_v4 = vmax.bf16 %v4440_v38, %v1911_v61  ;;  %v1920_v60 = vld [vmem:[#allocation4 + $0x18] sm:$0x2]  ;;  %v5415_v38 = vld [vmem:[%s7238_s7 + $0x180] ss:$16 sps:$4 sm:$0xff]  }
 0x308   :  { %v5426_v61 = vld [vmem:[%s7238_s7 + $0x1ac] ss:$16 sps:$4 sm:$0xff]  }
 0x309   :  { %2785 = vmatpush1.bf16.msra.mxu0 %v5253_v8  ;;  %2867 = vmatpush1.bf16.msra.mxu1 %v5256_v2  ;;  %v1949_v5 = vrot.slane %v4445_v24, 2  ;;  %v5340_v8 = vld [vmem:[%s7236_s5 + $0x3e8] ss:$16 sps:$4 sm:$0xff]   ;;  %v1918_v2 = vld [vmem:[#allocation4 + $0x18] sm:$0x1] }
 0x30a   :  { %2786 = vmatprep.subr.bf16.mxu0 %v5261_v37  ;;  %2868 = vmatprep.subr.bf16.mxu1 %v5264_v10  ;;  %v1919_v37 = vmax.bf16 %v1918_v2, %v1917_v4  ;;  %v5345_v10 = vld [vmem:[%s7238_s7 + $0x4] ss:$16 sps:$4 sm:$0xff]   ;;  %v5348_v24 = vld [vmem:[%s7238_s7 + $0xc] ss:$16 sps:$4 sm:$0xff]   ;;  %v5427_v4 = vld [vmem:[%s7238_s7 + $0x1c0] ss:$16 sps:$4 sm:$0xff]  }
 0x30b   :  { %2814 = vmatprep.mubr.bf16.mxu0 %v1949_v5  ;;  %2896 = vmatprep.mubr.bf16.mxu1 %v1949_v5  ;;  %v5343_v5 = vld [vmem:[%s7238_s7] ss:$16 sps:$4 sm:$0xff]   ;;  %v5432_v2 = vld [vmem:[%s7238_s7 + $0x1cc] ss:$16 sps:$4 sm:$0xff]  }
 0x30d   :  { %2787 = vmatpush1.bf16.msra.mxu0 %v5259_v62  ;;  %2869 = vmatpush1.bf16.msra.mxu1 %v5262_v7  ;;  %v4441_v62 = vrot.slane %v1920_v60, 9  ;;  %v5346_v7 = vld [vmem:[%s7238_s7 + $0x8] ss:$16 sps:$4 sm:$0xff]   ;;  %v5435_v60 = vld [vmem:[%s7238_s7 + $0x1e4] ss:$16 sps:$4 sm:$0xff]  }
 0x30e   :  { %2788 = vmatprep.subr.bf16.mxu0 %v5267_v63  ;;  %2870 = vmatprep.subr.bf16.mxu1 %v5270_v6  ;;  %v5351_v6 = vld [vmem:[%s7238_s7 + $0x24] ss:$16 sps:$4 sm:$0xff]  }
 0x30f   :  { %v1925_v63 = vmax.bf16 %v4441_v62, %v1919_v37  ;;  %v5433_v37 = vld [vmem:[%s7238_s7 + $0x1e0] ss:$16 sps:$4 sm:$0xff]   ;;  %v5441_v62 = vld [vmem:[%s7238_s7 + $0x204] ss:$16 sps:$4 sm:$0xff]  }
 0x311   :  { %2789 = vmatpush1.bf16.msra.mxu0 %v5265_v45  ;;  %2871 = vmatpush1.bf16.msra.mxu1 %v5268_v11  ;;  %v5354_v45 = vld [vmem:[%s7238_s7 + $0x2c] ss:$16 sps:$4 sm:$0xff]   ;;  %v5349_v11 = vld [vmem:[%s7238_s7 + $0x20] ss:$16 sps:$4 sm:$0xff]  }
 0x312   :  { %2790 = vmatprep.subr.bf16.mxu0 %v5273_v48  ;;  %2872 = vmatprep.subr.bf16.mxu1 %v5276_v17  ;;  %v5352_v48 = vld [vmem:[%s7238_s7 + $0x28] ss:$16 sps:$4 sm:$0xff]   ;;  %v5357_v17 = vld [vmem:[%s7238_s7 + $0x44] ss:$16 sps:$4 sm:$0xff]  }
 0x315   :  { %2791 = vmatpush1.bf16.msra.mxu0 %v5271_v19  ;;  %2873 = vmatpush1.bf16.msra.mxu1 %v5274_v14  ;;  %v5360_v19 = vld [vmem:[%s7238_s7 + $0x4c] ss:$16 sps:$4 sm:$0xff]   ;;  %v5355_v14 = vld [vmem:[%s7238_s7 + $0x40] ss:$16 sps:$4 sm:$0xff]  }
 0x316   :  { %2792 = vmatprep.subr.bf16.mxu0 %v5279_v52  ;;  %2874 = vmatprep.subr.bf16.mxu1 %v5282_v53  ;;  %v5358_v52 = vld [vmem:[%s7238_s7 + $0x48] ss:$16 sps:$4 sm:$0xff]   ;;  %v5363_v53 = vld [vmem:[%s7238_s7 + $0x64] ss:$16 sps:$4 sm:$0xff]  }
 0x319   :  { %2793 = vmatpush1.bf16.msra.mxu0 %v5277_v22  ;;  %2875 = vmatpush1.bf16.msra.mxu1 %v5280_v54  ;;  %v5366_v22 = vld [vmem:[%s7238_s7 + $0x6c] ss:$16 sps:$4 sm:$0xff]   ;;  %v5361_v54 = vld [vmem:[%s7238_s7 + $0x60] ss:$16 sps:$4 sm:$0xff]  }
 0x31a   :  { %2794 = vmatprep.subr.bf16.mxu0 %v5285_v55  ;;  %2876 = vmatprep.subr.bf16.mxu1 %v5288_v16  ;;  %v5364_v55 = vld [vmem:[%s7238_s7 + $0x68] ss:$16 sps:$4 sm:$0xff]   ;;  %v5369_v16 = vld [vmem:[%s7238_s7 + $0x84] ss:$16 sps:$4 sm:$0xff]  }
 0x31d   :  { %2795 = vmatpush1.bf16.msra.mxu0 %v5283_v21  ;;  %2877 = vmatpush1.bf16.msra.mxu1 %v5286_v40  ;;  %v5372_v21 = vld [vmem:[%s7238_s7 + $0x8c] ss:$16 sps:$4 sm:$0xff]   ;;  %v5367_v40 = vld [vmem:[%s7238_s7 + $0x80] ss:$16 sps:$4 sm:$0xff]  }
 0x31e   :  { %2796 = vmatprep.subr.bf16.mxu0 %v5291_v9  ;;  %2878 = vmatprep.subr.bf16.mxu1 %v5294_v27  ;;  %v5370_v9 = vld [vmem:[%s7238_s7 + $0x88] ss:$16 sps:$4 sm:$0xff]   ;;  %v5375_v27 = vld [vmem:[%s7238_s7 + $0xa4] ss:$16 sps:$4 sm:$0xff]  }
 0x321   :  { %2797 = vmatpush1.bf16.msra.mxu0 %v5289_v28  ;;  %2879 = vmatpush1.bf16.msra.mxu1 %v5292_v34  ;;  %v5378_v28 = vld [vmem:[%s7238_s7 + $0xac] ss:$16 sps:$4 sm:$0xff]   ;;  %v5373_v34 = vld [vmem:[%s7238_s7 + $0xa0] ss:$16 sps:$4 sm:$0xff]  }
 0x322   :  { %2798 = vmatprep.subr.bf16.mxu0 %v5297_v57  ;;  %2880 = vmatprep.subr.bf16.mxu1 %v5300_v39  ;;  %v5376_v57 = vld [vmem:[%s7238_s7 + $0xa8] ss:$16 sps:$4 sm:$0xff]   ;;  %v5381_v39 = vld [vmem:[%s7238_s7 + $0xc4] ss:$16 sps:$4 sm:$0xff]  }
 0x325   :  { %2799 = vmatpush1.bf16.msra.mxu0 %v5295_v50  ;;  %2881 = vmatpush1.bf16.msra.mxu1 %v5298_v26  ;;  %v5384_v50 = vld [vmem:[%s7238_s7 + $0xcc] ss:$16 sps:$4 sm:$0xff]   ;;  %v5379_v26 = vld [vmem:[%s7238_s7 + $0xc0] ss:$16 sps:$4 sm:$0xff]  }
 0x326   :  { %2800 = vmatprep.subr.bf16.mxu0 %v5303_v46  ;;  %2882 = vmatprep.subr.bf16.mxu1 %v5306_v30  ;;  %v5382_v46 = vld [vmem:[%s7238_s7 + $0xc8] ss:$16 sps:$4 sm:$0xff]   ;;  %v5387_v30 = vld [vmem:[%s7238_s7 + $0xe4] ss:$16 sps:$4 sm:$0xff]  }
 0x329   :  { %2801 = vmatpush1.bf16.msra.mxu0 %v5301_v32  ;;  %2883 = vmatpush1.bf16.msra.mxu1 %v5304_v42  ;;  %v5390_v32 = vld [vmem:[%s7238_s7 + $0xec] ss:$16 sps:$4 sm:$0xff]   ;;  %v5385_v42 = vld [vmem:[%s7238_s7 + $0xe0] ss:$16 sps:$4 sm:$0xff]  }
 0x32a   :  { %2802 = vmatprep.subr.bf16.mxu0 %v5309_v13  ;;  %2884 = vmatprep.subr.bf16.mxu1 %v5312_v31  ;;  %v5388_v13 = vld [vmem:[%s7238_s7 + $0xe8] ss:$16 sps:$4 sm:$0xff]   ;;  %v5393_v31 = vld [vmem:[%s7238_s7 + $0x104] ss:$16 sps:$4 sm:$0xff]  }
 0x32d   :  { %2803 = vmatpush1.bf16.msra.mxu0 %v5307_v51  ;;  %2885 = vmatpush1.bf16.msra.mxu1 %v5310_v29  ;;  %v5396_v51 = vld [vmem:[%s7238_s7 + $0x10c] ss:$16 sps:$4 sm:$0xff]   ;;  %v5391_v29 = vld [vmem:[%s7238_s7 + $0x100] ss:$16 sps:$4 sm:$0xff]  }
 0x32e   :  { %2804 = vmatprep.subr.bf16.mxu0 %v5315_v56  ;;  %2886 = vmatprep.subr.bf16.mxu1 %v5318_v33  ;;  %v5394_v56 = vld [vmem:[%s7238_s7 + $0x108] ss:$16 sps:$4 sm:$0xff]   ;;  %v5399_v33 = vld [vmem:[%s7238_s7 + $0x124] ss:$16 sps:$4 sm:$0xff]  }
 0x331   :  { %2805 = vmatpush1.bf16.msra.mxu0 %v5313_v1  ;;  %2887 = vmatpush1.bf16.msra.mxu1 %v5316_v35  ;;  %v5402_v1 = vld [vmem:[%s7238_s7 + $0x12c] ss:$16 sps:$4 sm:$0xff]   ;;  %v5397_v35 = vld [vmem:[%s7238_s7 + $0x120] ss:$16 sps:$4 sm:$0xff]  }
 0x332   :  { %2806 = vmatprep.subr.bf16.mxu0 %v5321_v44  ;;  %2888 = vmatprep.subr.bf16.mxu1 %v5324_v18  ;;  %v5400_v44 = vld [vmem:[%s7238_s7 + $0x128] ss:$16 sps:$4 sm:$0xff]   ;;  %v5405_v18 = vld [vmem:[%s7238_s7 + $0x144] ss:$16 sps:$4 sm:$0xff]  }
 0x335   :  { %2807 = vmatpush1.bf16.msra.mxu0 %v5319_v47  ;;  %2889 = vmatpush1.bf16.msra.mxu1 %v5322_v49  ;;  %v5408_v47 = vld [vmem:[%s7238_s7 + $0x14c] ss:$16 sps:$4 sm:$0xff]   ;;  %v5403_v49 = vld [vmem:[%s7238_s7 + $0x140] ss:$16 sps:$4 sm:$0xff]  }
 0x336   :  { %2808 = vmatprep.subr.bf16.mxu0 %v5327_v23  ;;  %2890 = vmatprep.subr.bf16.mxu1 %v5330_v41  ;;  %v5406_v23 = vld [vmem:[%s7238_s7 + $0x148] ss:$16 sps:$4 sm:$0xff]   ;;  %v5411_v41 = vld [vmem:[%s7238_s7 + $0x164] ss:$16 sps:$4 sm:$0xff]  }
 0x339   :  { %2809 = vmatpush1.bf16.msra.mxu0 %v5325_v12  ;;  %2891 = vmatpush1.bf16.msra.mxu1 %v5328_v25  ;;  %v5409_v12 = vld [vmem:[%s7238_s7 + $0x160] ss:$16 sps:$4 sm:$0xff]   ;;  %v5412_v25 = vld [vmem:[%s7238_s7 + $0x168] ss:$16 sps:$4 sm:$0xff]  }
 0x33a   :  { %2810 = vmatprep.subr.bf16.mxu0 %v5333_v58  ;;  %2892 = vmatprep.subr.bf16.mxu1 %v5336_v36  ;;  %v5417_v58 = vld [vmem:[%s7238_s7 + $0x184] ss:$16 sps:$4 sm:$0xff]   ;;  %v5420_v36 = vld [vmem:[%s7238_s7 + $0x18c] ss:$16 sps:$4 sm:$0xff]  }
 0x33d   :  { %2811 = vmatpush1.bf16.msra.mxu0 %v5331_v15  ;;  %2893 = vmatpush1.bf16.msra.mxu1 %v5334_v20  ;;  %v5418_v15 = vld [vmem:[%s7238_s7 + $0x188] ss:$16 sps:$4 sm:$0xff]   ;;  %v5423_v20 = vld [vmem:[%s7238_s7 + $0x1a4] ss:$16 sps:$4 sm:$0xff]  }
 0x33e   :  { %2812 = vmatprep.subr.bf16.mxu0 %v5339_v43  ;;  %2894 = vmatprep.subr.bf16.mxu1 %v5342_v3  ;;  %v5421_v43 = vld [vmem:[%s7238_s7 + $0x1a0] ss:$16 sps:$4 sm:$0xff]   ;;  %v5424_v3 = vld [vmem:[%s7238_s7 + $0x1a8] ss:$16 sps:$4 sm:$0xff]  }
 0x341   :  { %2813 = vmatpush1.bf16.msra.mxu0 %v5337_v59  ;;  %2895 = vmatpush1.bf16.msra.mxu1 %v5340_v8  ;;  %v5429_v59 = vld [vmem:[%s7238_s7 + $0x1c4] ss:$16 sps:$4 sm:$0xff]   ;;  %v5430_v8 = vld [vmem:[%s7238_s7 + $0x1c8] ss:$16 sps:$4 sm:$0xff]  }
 0x342   :  { %3703 = vmatprep.subr.bf16.mxu0 %v5345_v10  ;;  %3785 = vmatprep.subr.bf16.mxu1 %v5348_v24  ;;  %v5438_v10 = vld [vmem:[%s7238_s7 + $0x1ec] ss:$16 sps:$4 sm:$0xff]   ;;  %v5436_v24 = vld [vmem:[%s7238_s7 + $0x1e8] ss:$16 sps:$4 sm:$0xff]  }
 0x344   :  { %2815 = vmatmul.mubr.bf16.vlgmr.msra.gmra.mrb[56].mxu0 %v1925_v63  ;;  %2897 = vmatmul.mubr.bf16.vlgmr.msra.gmra.mrb[40].mxu1 %v1925_v63 }
 0x345   :  { %3704 = vmatpush1.bf16.msra.mxu0 %v5343_v5  ;;  %3786 = vmatpush1.bf16.msra.mxu1 %v5346_v7  ;;  %v5444_v5 = vld [vmem:[%s7238_s7 + $0x20c] ss:$16 sps:$4 sm:$0xff]   ;;  %v2081_v7 = vlaneseq }
 0x346   :  { %3705 = vmatprep.subr.bf16.mxu0 %v5351_v6  ;;  %3787 = vmatprep.subr.bf16.mxu1 %v5354_v45  ;;  %v6903_v45 = vld [vmem:[%s7237_s6] sm:$0xf] }
 0x347   :  { %v6897_v63 = vshrl.u32 %v2081_v7, 7  ;;  %v5501_v7 = vld [vmem:[%s7238_s7 + $0x344] ss:$16 sps:$4 sm:$0xff]  }
 0x349   :  { %3706 = vmatpush1.bf16.msra.mxu0 %v5349_v11  ;;  %3788 = vmatpush1.bf16.msra.mxu1 %v5352_v48  ;;  %v2083_v6 = vsub.s32 0, %v6897_v63  ;;  %v2087_v11 = vsub.s32 1, %v6897_v63  ;;  %v2095_v48 = vsub.s32 3, %v6897_v63 }
 0x34a   :  { %3707 = vmatprep.subr.bf16.mxu0 %v5357_v17  ;;  %3789 = vmatprep.subr.bf16.mxu1 %v5360_v19 }
 0x34b   :  { %v2084_v17 = vrot.slane %v6903_v45, %v2083_v6  ;;  %v2088_v19 = vrot.slane %v6903_v45, %v2087_v11 }
 0x34d   :  { %3708 = vmatpush1.bf16.msra.mxu0 %v5355_v14  ;;  %3790 = vmatpush1.bf16.msra.mxu1 %v5358_v52  ;;  %v2096_v14 = vrot.slane %v6903_v45, %v2095_v48 }
 0x34e   :  { %3709 = vmatprep.subr.bf16.mxu0 %v5363_v53  ;;  %3791 = vmatprep.subr.bf16.mxu1 %v5366_v22 }
 0x351   :  { %3710 = vmatpush1.bf16.msra.mxu0 %v5361_v54  ;;  %3792 = vmatpush1.bf16.msra.mxu1 %v5364_v55 }
 0x352   :  { %3711 = vmatprep.subr.bf16.mxu0 %v5369_v16  ;;  %3793 = vmatprep.subr.bf16.mxu1 %v5372_v21 }
 0x355   :  { %3712 = vmatpush1.bf16.msra.mxu0 %v5367_v40  ;;  %3794 = vmatpush1.bf16.msra.mxu1 %v5370_v9 }
 0x356   :  { %3713 = vmatprep.subr.bf16.mxu0 %v5375_v27  ;;  %3795 = vmatprep.subr.bf16.mxu1 %v5378_v28 }
 0x359   :  { %3714 = vmatpush1.bf16.msra.mxu0 %v5373_v34  ;;  %3796 = vmatpush1.bf16.msra.mxu1 %v5376_v57 }
 0x35a   :  { %3715 = vmatprep.subr.bf16.mxu0 %v5381_v39  ;;  %3797 = vmatprep.subr.bf16.mxu1 %v5384_v50 }
 0x35d   :  { %3716 = vmatpush1.bf16.msra.mxu0 %v5379_v26  ;;  %3798 = vmatpush1.bf16.msra.mxu1 %v5382_v46  ;;  %v5439_v26 = vld [vmem:[%s7238_s7 + $0x200] ss:$16 sps:$4 sm:$0xff]   ;;  %v5442_v46 = vld [vmem:[%s7238_s7 + $0x208] ss:$16 sps:$4 sm:$0xff]  }
 0x35e   :  { %3717 = vmatprep.subr.bf16.mxu0 %v5387_v30  ;;  %3799 = vmatprep.subr.bf16.mxu1 %v5390_v32  ;;  %v5447_v32 = vld [vmem:[%s7238_s7 + $0x224] ss:$16 sps:$4 sm:$0xff]  }
 0x361   :  { %3718 = vmatpush1.bf16.msra.mxu0 %v5385_v42  ;;  %3800 = vmatpush1.bf16.msra.mxu1 %v5388_v13  ;;  %v5450_v42 = vld [vmem:[%s7238_s7 + $0x22c] ss:$16 sps:$4 sm:$0xff]  }
 0x362   :  { %3719 = vmatprep.subr.bf16.mxu0 %v5393_v31  ;;  %3801 = vmatprep.subr.bf16.mxu1 %v5396_v51  ;;  %v5445_v31 = vld [vmem:[%s7238_s7 + $0x220] ss:$16 sps:$4 sm:$0xff]   ;;  %v5448_v51 = vld [vmem:[%s7238_s7 + $0x228] ss:$16 sps:$4 sm:$0xff]  }
 0x365   :  { %3720 = vmatpush1.bf16.msra.mxu0 %v5391_v29  ;;  %3802 = vmatpush1.bf16.msra.mxu1 %v5394_v56  ;;  %v5453_v29 = vld [vmem:[%s7238_s7 + $0x244] ss:$16 sps:$4 sm:$0xff]   ;;  %v5456_v56 = vld [vmem:[%s7238_s7 + $0x24c] ss:$16 sps:$4 sm:$0xff]  }
 0x366   :  { %3721 = vmatprep.subr.bf16.mxu0 %v5399_v33  ;;  %3803 = vmatprep.subr.bf16.mxu1 %v5402_v1  ;;  %v5451_v33 = vld [vmem:[%s7238_s7 + $0x240] ss:$16 sps:$4 sm:$0xff]   ;;  %v5454_v1 = vld [vmem:[%s7238_s7 + $0x248] ss:$16 sps:$4 sm:$0xff]  }
 0x369   :  { %3722 = vmatpush1.bf16.msra.mxu0 %v5397_v35  ;;  %3804 = vmatpush1.bf16.msra.mxu1 %v5400_v44  ;;  %v5459_v35 = vld [vmem:[%s7238_s7 + $0x264] ss:$16 sps:$4 sm:$0xff]   ;;  %v5462_v44 = vld [vmem:[%s7238_s7 + $0x26c] ss:$16 sps:$4 sm:$0xff]  }
 0x36a   :  { %3723 = vmatprep.subr.bf16.mxu0 %v5405_v18  ;;  %3805 = vmatprep.subr.bf16.mxu1 %v5408_v47  ;;  %v5457_v18 = vld [vmem:[%s7238_s7 + $0x260] ss:$16 sps:$4 sm:$0xff]   ;;  %v5460_v47 = vld [vmem:[%s7238_s7 + $0x268] ss:$16 sps:$4 sm:$0xff]  }
 0x36d   :  { %3724 = vmatpush1.bf16.msra.mxu0 %v5403_v49  ;;  %3806 = vmatpush1.bf16.msra.mxu1 %v5406_v23  ;;  %v5465_v49 = vld [vmem:[%s7238_s7 + $0x284] ss:$16 sps:$4 sm:$0xff]   ;;  %v5468_v23 = vld [vmem:[%s7238_s7 + $0x28c] ss:$16 sps:$4 sm:$0xff]  }
 0x36e   :  { %3725 = vmatprep.subr.bf16.mxu0 %v5411_v41  ;;  %3807 = vmatprep.subr.bf16.mxu1 %v5414_v0  ;;  %v5463_v41 = vld [vmem:[%s7238_s7 + $0x280] ss:$16 sps:$4 sm:$0xff]   ;;  %v5466_v0 = vld [vmem:[%s7238_s7 + $0x288] ss:$16 sps:$4 sm:$0xff]  }
 0x371   :  { %3726 = vmatpush1.bf16.msra.mxu0 %v5409_v12  ;;  %3808 = vmatpush1.bf16.msra.mxu1 %v5412_v25  ;;  %v5471_v12 = vld [vmem:[%s7238_s7 + $0x2a4] ss:$16 sps:$4 sm:$0xff]   ;;  %v5474_v25 = vld [vmem:[%s7238_s7 + $0x2ac] ss:$16 sps:$4 sm:$0xff]  }
 0x372   :  { %3727 = vmatprep.subr.bf16.mxu0 %v5417_v58  ;;  %3809 = vmatprep.subr.bf16.mxu1 %v5420_v36  ;;  %v5469_v58 = vld [vmem:[%s7238_s7 + $0x2a0] ss:$16 sps:$4 sm:$0xff]   ;;  %v5472_v36 = vld [vmem:[%s7238_s7 + $0x2a8] ss:$16 sps:$4 sm:$0xff]  }
 0x375   :  { %3728 = vmatpush1.bf16.msra.mxu0 %v5415_v38  ;;  %3810 = vmatpush1.bf16.msra.mxu1 %v5418_v15  ;;  %v5477_v38 = vld [vmem:[%s7238_s7 + $0x2c4] ss:$16 sps:$4 sm:$0xff]   ;;  %v5480_v15 = vld [vmem:[%s7238_s7 + $0x2cc] ss:$16 sps:$4 sm:$0xff]  }
 0x376   :  { %3729 = vmatprep.subr.bf16.mxu0 %v5423_v20  ;;  %3811 = vmatprep.subr.bf16.mxu1 %v5426_v61  ;;  %v5475_v20 = vld [vmem:[%s7238_s7 + $0x2c0] ss:$16 sps:$4 sm:$0xff]   ;;  %v5478_v61 = vld [vmem:[%s7238_s7 + $0x2c8] ss:$16 sps:$4 sm:$0xff]  }
 0x379   :  { %3730 = vmatpush1.bf16.msra.mxu0 %v5421_v43  ;;  %3812 = vmatpush1.bf16.msra.mxu1 %v5424_v3  ;;  %v5483_v43 = vld [vmem:[%s7238_s7 + $0x2e4] ss:$16 sps:$4 sm:$0xff]   ;;  %v5486_v3 = vld [vmem:[%s7238_s7 + $0x2ec] ss:$16 sps:$4 sm:$0xff]  }
 0x37a   :  { %3731 = vmatprep.subr.bf16.mxu0 %v5429_v59  ;;  %3813 = vmatprep.subr.bf16.mxu1 %v5432_v2  ;;  %v5484_v59 = vld [vmem:[%s7238_s7 + $0x2e8] ss:$16 sps:$4 sm:$0xff]   ;;  %v5492_v2 = vld [vmem:[%s7238_s7 + $0x30c] ss:$16 sps:$4 sm:$0xff]  }
 0x37d   :  { %3732 = vmatpush1.bf16.msra.mxu0 %v5427_v4  ;;  %3814 = vmatpush1.bf16.msra.mxu1 %v5430_v8  ;;  %v5481_v4 = vld [vmem:[%s7238_s7 + $0x2e0] ss:$16 sps:$4 sm:$0xff]   ;;  %v5489_v8 = vld [vmem:[%s7238_s7 + $0x304] ss:$16 sps:$4 sm:$0xff]  }
 0x37e   :  { %3733 = vmatprep.subr.bf16.mxu0 %v5435_v60  ;;  %3815 = vmatprep.subr.bf16.mxu1 %v5438_v10  ;;  %v5487_v60 = vld [vmem:[%s7238_s7 + $0x300] ss:$16 sps:$4 sm:$0xff]   ;;  %v5495_v10 = vld [vmem:[%s7238_s7 + $0x324] ss:$16 sps:$4 sm:$0xff]  }
 0x381   :  { %3734 = vmatpush1.bf16.msra.mxu0 %v5433_v37  ;;  %3816 = vmatpush1.bf16.msra.mxu1 %v5436_v24  ;;  %v5490_v37 = vld [vmem:[%s7238_s7 + $0x308] ss:$16 sps:$4 sm:$0xff]   ;;  %v5498_v24 = vld [vmem:[%s7238_s7 + $0x32c] ss:$16 sps:$4 sm:$0xff]  }
 0x382   :  { %3744 = vmatprep.subr.bf16.mxu0 %v5441_v62  ;;  %3826 = vmatprep.subr.bf16.mxu1 %v5444_v5  ;;  %v5493_v62 = vld [vmem:[%s7238_s7 + $0x320] ss:$16 sps:$4 sm:$0xff]   ;;  %v5496_v5 = vld [vmem:[%s7238_s7 + $0x328] ss:$16 sps:$4 sm:$0xff]  }
 0x417   :  { %v2816_v52 = vpop.f32.mrb[56].mxu0  ;;  %v6916_v53 = vpop.f32.mrb[40].mxu1 }
 0x418   :  { %v5000_v22 = vadd.f32 %v2816_v52, %v2084_v17  ;;  %v2818_v54 = vpop.f32.mrb[57].mxu0  ;;  %v2900_v55 = vpop.f32.mrb[41].mxu1  ;;  %v5504_v17 = vld [vmem:[%s7238_s7 + $0x34c] ss:$16 sps:$4 sm:$0xff]   ;;  %v5507_v52 = vld [vmem:[%s7238_s7 + $0x364] ss:$16 sps:$4 sm:$0xff]  }
 0x419   :  { %v5001_v16 = vadd.f32 %v2818_v54, %v2088_v19  ;;  %v5003_v21 = vadd.f32 %v2900_v55, %v2096_v14  ;;  %v2820_v40 = vpop.f32.mrb[58].mxu0  ;;  %v2902_v9 = vpop.f32.mrb[42].mxu1  ;;  %v5499_v19 = vld [vmem:[%s7238_s7 + $0x340] ss:$16 sps:$4 sm:$0xff]   ;;  %v5502_v14 = vld [vmem:[%s7238_s7 + $0x348] ss:$16 sps:$4 sm:$0xff]  }
 0x41a   :  { %v2905_v27 = vmax.f32 %v5000_v22, 0.0  ;;  %v2821_v28 = vpop.f32.mrb[59].mxu0  ;;  %v2903_v34 = vpop.f32.mrb[43].mxu1  ;;  %v5510_v22 = vld [vmem:[%s7238_s7 + $0x36c] ss:$16 sps:$4 sm:$0xff]  }
 0x41b   :  { %v2906_v57 = vmax.f32 %v5001_v16, 0.0  ;;  %v2908_v39 = vmax.f32 %v5003_v21, 0.0  ;;  %v5505_v54 = vld [vmem:[%s7238_s7 + $0x360] ss:$16 sps:$4 sm:$0xff]   ;;  %v5508_v55 = vld [vmem:[%s7238_s7 + $0x368] ss:$16 sps:$4 sm:$0xff]  }
 0x41c   :  { %v2909_v30 = vpack.c.bf16 %v2905_v27, %v2905_v27  ;;  %v5513_v16 = vld [vmem:[%s7238_s7 + $0x384] ss:$16 sps:$4 sm:$0xff]   ;;  %v5516_v21 = vld [vmem:[%s7238_s7 + $0x38c] ss:$16 sps:$4 sm:$0xff]   ;;  %v5511_v40 = vld [vmem:[%s7238_s7 + $0x380] ss:$16 sps:$4 sm:$0xff]  }
 0x41d   :  { %v2910_v50 = vpack.c.bf16 %v2906_v57, %v2906_v57  ;;  %v2912_v13 = vpack.c.bf16 %v2908_v39, %v2908_v39  ;;  %v5514_v9 = vld [vmem:[%s7238_s7 + $0x388] ss:$16 sps:$4 sm:$0xff]   ;;  %v2091_v27 = vsub.s32 2, %v6897_v63  ;;  %v5519_v28 = vld [vmem:[%s7238_s7 + $0x3a4] ss:$16 sps:$4 sm:$0xff]  }
 0x41e   :  { %v5522_v34 = vld [vmem:[%s7238_s7 + $0x3ac] ss:$16 sps:$4 sm:$0xff]   ;;  %v5517_v57 = vld [vmem:[%s7238_s7 + $0x3a0] ss:$16 sps:$4 sm:$0xff]   ;;  %v5520_v39 = vld [vmem:[%s7238_s7 + $0x3a8] ss:$16 sps:$4 sm:$0xff]  }
 0x41f   :  { %3735 = vmatprep.mubr.bf16.mxu0 %v2910_v50  ;;  %3817 = vmatprep.mubr.bf16.mxu1 %v2910_v50  ;;  %v2092_v50 = vrot.slane %v6903_v45, %v2091_v27  ;;  %v5526_v45 = vld [vmem:[%s7238_s7 + $0x3c8] ss:$16 sps:$4 sm:$0xff]  }
 0x420   :  { %3736 = vmatmul.mubr.bf16.vlgmr.msra.gmra.mrb[60].mxu0 %v2909_v30  ;;  %3818 = vmatmul.mubr.bf16.vlgmr.msra.gmra.mrb[44].mxu1 %v2909_v30  ;;  %v5523_v30 = vld [vmem:[%s7238_s7 + $0x3c0] ss:$16 sps:$4 sm:$0xff]   ;;  %v5566_v63 = vld [vmem:[%s7240_s9 + $0xb8] sm:$0xff]  }
 0x421   :  { %3745 = vmatpush1.bf16.msra.mxu0 %v5439_v26  ;;  %3827 = vmatpush1.bf16.msra.mxu1 %v5442_v46  ;;  %v5525_v26 = vld [vmem:[%s7238_s7 + $0x3c4] ss:$16 sps:$4 sm:$0xff]   ;;  %v5528_v46 = vld [vmem:[%s7238_s7 + $0x3cc] ss:$16 sps:$4 sm:$0xff]  }
 0x422   :  { %3776 = vmatprep.mubr.bf16.mxu0 %v2912_v13  ;;  %3858 = vmatprep.mubr.bf16.mxu1 %v2912_v13  ;;  %v5534_v13 = vld [vmem:[%s7238_s7 + $0x3ec] ss:$16 sps:$4 sm:$0xff]  }
 0x423   :  { %3746 = vmatprep.subr.bf16.mxu0 %v5447_v32  ;;  %3828 = vmatprep.subr.bf16.mxu1 %v5450_v42  ;;  %v5002_v32 = vadd.f32 %v6916_v53, %v2092_v50  ;;  %v5531_v42 = vld [vmem:[%s7238_s7 + $0x3e4] ss:$16 sps:$4 sm:$0xff]   ;;  %v5532_v53 = vld [vmem:[%s7238_s7 + $0x3e8] ss:$16 sps:$4 sm:$0xff]  }
 0x424   :  { %v5563_v50 = vld [vmem:[%s7240_s9 + $0xf0] sm:$0xff]  }
 0x425   :  { %3747 = vmatpush1.bf16.msra.mxu0 %v5445_v31  ;;  %3829 = vmatpush1.bf16.msra.mxu1 %v5448_v51  ;;  %v5529_v31 = vld [vmem:[%s7238_s7 + $0x3e0] ss:$16 sps:$4 sm:$0xff]   ;;  %v2907_v51 = vmax.f32 %v5002_v32, 0.0 }
 0x426   :  { %3748 = vmatprep.subr.bf16.mxu0 %v5453_v29  ;;  %3830 = vmatprep.subr.bf16.mxu1 %v5456_v56  ;;  %v5535_v29 = vld [vmem:[%s7240_s9 + $0x40] sm:$0xff]  }
 0x427   :  { %v5536_v56 = vld [vmem:[%s7240_s9] sm:$0xff]  }
 0x429   :  { %3749 = vmatpush1.bf16.msra.mxu0 %v5451_v33  ;;  %3831 = vmatpush1.bf16.msra.mxu1 %v5454_v1  ;;  %v2911_v33 = vpack.c.bf16 %v2907_v51, %v2907_v51  ;;  %v5537_v1 = vld [vmem:[%s7240_s9 + $0x48] sm:$0xff]   ;;  %v4702_v51 = vld [vmem:[%s7241_s10] ss:$0 sm:$0xff] }
 0x42a   :  { %3750 = vmatprep.subr.bf16.mxu0 %v5459_v35  ;;  %3832 = vmatprep.subr.bf16.mxu1 %v5462_v44  ;;  %v5538_v35 = vld [vmem:[%s7240_s9 + $0x8] sm:$0xff]   ;;  %v5539_v44 = vld [vmem:[%s7240_s9 + $0x50] sm:$0xff]  }
 0x42d   :  { %3751 = vmatpush1.bf16.msra.mxu0 %v5457_v18  ;;  %3833 = vmatpush1.bf16.msra.mxu1 %v5460_v47  ;;  %v5540_v18 = vld [vmem:[%s7240_s9 + $0x10] sm:$0xff]   ;;  %v5541_v47 = vld [vmem:[%s7240_s9 + $0x58] sm:$0xff]  }
 0x42e   :  { %3752 = vmatprep.subr.bf16.mxu0 %v5465_v49  ;;  %3834 = vmatprep.subr.bf16.mxu1 %v5468_v23  ;;  %v5542_v49 = vld [vmem:[%s7240_s9 + $0x18] sm:$0xff]   ;;  %v5543_v23 = vld [vmem:[%s7240_s9 + $0x60] sm:$0xff]  }
 0x431   :  { %3753 = vmatpush1.bf16.msra.mxu0 %v5463_v41  ;;  %3835 = vmatpush1.bf16.msra.mxu1 %v5466_v0  ;;  %v5544_v41 = vld [vmem:[%s7240_s9 + $0x20] sm:$0xff]   ;;  %v5545_v0 = vld [vmem:[%s7240_s9 + $0x68] sm:$0xff]  }
 0x432   :  { %3754 = vmatprep.subr.bf16.mxu0 %v5471_v12  ;;  %3836 = vmatprep.subr.bf16.mxu1 %v5474_v25  ;;  %v5546_v12 = vld [vmem:[%s7240_s9 + $0x28] sm:$0xff]   ;;  %v5547_v25 = vld [vmem:[%s7240_s9 + $0x70] sm:$0xff]  }
 0x435   :  { %3755 = vmatpush1.bf16.msra.mxu0 %v5469_v58  ;;  %3837 = vmatpush1.bf16.msra.mxu1 %v5472_v36  ;;  %v5548_v58 = vld [vmem:[%s7240_s9 + $0x30] sm:$0xff]   ;;  %v5549_v36 = vld [vmem:[%s7240_s9 + $0x78] sm:$0xff]  }
 0x436   :  { %3756 = vmatprep.subr.bf16.mxu0 %v5477_v38  ;;  %3838 = vmatprep.subr.bf16.mxu1 %v5480_v15  ;;  %v5550_v38 = vld [vmem:[%s7240_s9 + $0x38] sm:$0xff]   ;;  %v5551_v15 = vld [vmem:[%s7240_s9 + $0xc0] sm:$0xff]  }
 0x439   :  { %3757 = vmatpush1.bf16.msra.mxu0 %v5475_v20  ;;  %3839 = vmatpush1.bf16.msra.mxu1 %v5478_v61  ;;  %v3041_v20 = vld [vmem:[%s7239_s8] sm:$0xf] }
 0x43a   :  { %3758 = vmatprep.subr.bf16.mxu0 %v5483_v43  ;;  %3840 = vmatprep.subr.bf16.mxu1 %v5486_v3  ;;  %v3046_v61 = vrot.slane %v3041_v20, %v2083_v6  ;;  %v3050_v43 = vrot.slane %v3041_v20, %v2087_v11  ;;  %v3058_v3 = vrot.slane %v3041_v20, %v2095_v48  ;;  %v5552_v11 = vld [vmem:[%s7240_s9 + $0x80] sm:$0xff]  }
 0x43d   :  { %3759 = vmatpush1.bf16.msra.mxu0 %v5481_v4  ;;  %3841 = vmatpush1.bf16.msra.mxu1 %v5484_v59 }
 0x43e   :  { %3760 = vmatprep.subr.bf16.mxu0 %v5489_v8  ;;  %3842 = vmatprep.subr.bf16.mxu1 %v5492_v2 }
 0x441   :  { %3761 = vmatpush1.bf16.msra.mxu0 %v5487_v60  ;;  %3843 = vmatpush1.bf16.msra.mxu1 %v5490_v37 }
 0x442   :  { %3762 = vmatprep.subr.bf16.mxu0 %v5495_v10  ;;  %3844 = vmatprep.subr.bf16.mxu1 %v5498_v24 }
 0x445   :  { %3763 = vmatpush1.bf16.msra.mxu0 %v5493_v62  ;;  %3845 = vmatpush1.bf16.msra.mxu1 %v5496_v5 }
 0x446   :  { %3764 = vmatprep.subr.bf16.mxu0 %v5501_v7  ;;  %3846 = vmatprep.subr.bf16.mxu1 %v5504_v17 }
 0x449   :  { %3765 = vmatpush1.bf16.msra.mxu0 %v5499_v19  ;;  %3847 = vmatpush1.bf16.msra.mxu1 %v5502_v14 }
 0x44a   :  { %3766 = vmatprep.subr.bf16.mxu0 %v5507_v52  ;;  %3848 = vmatprep.subr.bf16.mxu1 %v5510_v22  ;;  %v5553_v52 = vld [vmem:[%s7240_s9 + $0xc8] sm:$0xff]  }
 0x44d   :  { %3767 = vmatpush1.bf16.msra.mxu0 %v5505_v54  ;;  %3849 = vmatpush1.bf16.msra.mxu1 %v5508_v55  ;;  %v5554_v54 = vld [vmem:[%s7240_s9 + $0x88] sm:$0xff]   ;;  %v5555_v55 = vld [vmem:[%s7240_s9 + $0xd0] sm:$0xff]  }
 0x44e   :  { %3768 = vmatprep.subr.bf16.mxu0 %v5513_v16  ;;  %3850 = vmatprep.subr.bf16.mxu1 %v5516_v21  ;;  %v5556_v16 = vld [vmem:[%s7240_s9 + $0x90] sm:$0xff]   ;;  %v5557_v21 = vld [vmem:[%s7240_s9 + $0xd8] sm:$0xff]  }
 0x451   :  { %3769 = vmatpush1.bf16.msra.mxu0 %v5511_v40  ;;  %3851 = vmatpush1.bf16.msra.mxu1 %v5514_v9  ;;  %v5558_v40 = vld [vmem:[%s7240_s9 + $0x98] sm:$0xff]   ;;  %v5559_v9 = vld [vmem:[%s7240_s9 + $0xe0] sm:$0xff]  }
 0x452   :  { %3770 = vmatprep.subr.bf16.mxu0 %v5519_v28  ;;  %3852 = vmatprep.subr.bf16.mxu1 %v5522_v34  ;;  %v5560_v28 = vld [vmem:[%s7240_s9 + $0xa0] sm:$0xff]   ;;  %v5561_v34 = vld [vmem:[%s7240_s9 + $0xe8] sm:$0xff]  }
 0x455   :  { %3771 = vmatpush1.bf16.msra.mxu0 %v5517_v57  ;;  %3853 = vmatpush1.bf16.msra.mxu1 %v5520_v39  ;;  %v5562_v57 = vld [vmem:[%s7240_s9 + $0xa8] sm:$0xff]   ;;  %v3054_v39 = vrot.slane %v3041_v20, %v2091_v27 }
 0x456   :  { %3772 = vmatprep.subr.bf16.mxu0 %v5525_v26  ;;  %3854 = vmatprep.subr.bf16.mxu1 %v5528_v46  ;;  %v5564_v26 = vld [vmem:[%s7240_s9 + $0xb0] sm:$0xff]  }
 0x459   :  { %3773 = vmatpush1.bf16.msra.mxu0 %v5523_v30  ;;  %3855 = vmatpush1.bf16.msra.mxu1 %v5526_v45  ;;  %v5565_v30 = vld [vmem:[%s7240_s9 + $0xf8] sm:$0xff]   ;;  %s5567_s9 = scalar_lea.vmem %s4226_s3, 32 }
 0x45a   :  { %3774 = vmatprep.subr.bf16.mxu0 %v5531_v42  ;;  %3856 = vmatprep.subr.bf16.mxu1 %v5534_v13  ;;  %p5568_p0 = scmp.ne.s32.totalorder %s4226_s3, %s5567_s9  ;;  %p5573_p2 = scmp.lt.s32.totalorder %s5567_s9, %s5567_s9 }
 0x45c   :  { %p5574_p3 = por %p5573_p2, %p5572_p1 }
 0x45d   :  { %3775 = vmatpush1.bf16.msra.mxu0 %v5529_v31  ;;  %3857 = vmatpush1.bf16.msra.mxu1 %v5532_v53 }
 0x45e   :  { %4878 = vmatprep.subr.bf16.mxu0 %v5535_v29  ;;  %p5575_p4 = pnand %p5574_p3, %p5568_p0 }
 0x460   :  { %3777 = vmatmul.mubr.bf16.vlgmr.msra.gmra.mrb[60].mxu0 %v2911_v33  ;;  %3859 = vmatmul.mubr.bf16.vlgmr.msra.gmra.mrb[44].mxu1 %v2911_v33 }
 0x461   :  { %4879 = vmatpush3.bf16.msra.mxu0 %v5536_v56 }
 0x462   :  { %4880 = vmatprep.subr.bf16.mxu0 %v5537_v1 }
 0x465   :  { %4881 = vmatpush3.bf16.msra.mxu0 %v5538_v35 }
 0x466   :  { %4882 = vmatprep.subr.bf16.mxu0 %v5539_v44 }
 0x469   :  { %4883 = vmatpush3.bf16.msra.mxu0 %v5540_v18 }
 0x46a   :  { %4884 = vmatprep.subr.bf16.mxu0 %v5541_v47 }
 0x46d   :  { %4885 = vmatpush3.bf16.msra.mxu0 %v5542_v49 }
 0x46e   :  { %4886 = vmatprep.subr.bf16.mxu0 %v5543_v23 }
 0x471   :  { %4887 = vmatpush3.bf16.msra.mxu0 %v5544_v41 }
 0x472   :  { %4888 = vmatprep.subr.bf16.mxu0 %v5545_v0 }
 0x475   :  { %4889 = vmatpush3.bf16.msra.mxu0 %v5546_v12 }
 0x476   :  { %4890 = vmatprep.subr.bf16.mxu0 %v5547_v25 }
 0x479   :  { %4891 = vmatpush3.bf16.msra.mxu0 %v5548_v58 }
 0x47a   :  { %4892 = vmatprep.subr.bf16.mxu0 %v5549_v36 }
 0x47d   :  { %4893 = vmatpush3.bf16.msra.mxu0 %v5550_v38 }
 0x47e   :  { %4900 = vmatprep.subr.bf16.mxu0 %v5551_v15 }
 0x533   :  { %v3778_v4 = vpop.f32.mrb[60].mxu0  ;;  %v3860_v59 = vpop.f32.mrb[44].mxu1 }
 0x534   :  { %v5004_v8 = vadd.f32 %v3778_v4, %v3046_v61  ;;  %v3780_v2 = vpop.f32.mrb[61].mxu0  ;;  %v3862_v60 = vpop.f32.mrb[45].mxu1  ;;  %v5006_v46 = vadd.f32 %v3860_v59, %v3054_v39 }
 0x535   :  { %v5005_v37 = vadd.f32 %v3780_v2, %v3050_v43  ;;  %v5007_v10 = vadd.f32 %v3862_v60, %v3058_v3  ;;  %v3782_v24 = vpop.f32.mrb[62].mxu0  ;;  %v3864_v62 = vpop.f32.mrb[46].mxu1 }
 0x536   :  { %v3867_v5 = vmax.f32 %v5004_v8, 0.0  ;;  %v3783_v7 = vpop.f32.mrb[63].mxu0  ;;  %v3865_v17 = vpop.f32.mrb[47].mxu1  ;;  %v3869_v27 = vmax.f32 %v5006_v46, 0.0 }
 0x537   :  { %v3868_v19 = vmax.f32 %v5005_v37, 0.0  ;;  %v3870_v6 = vmax.f32 %v5007_v10, 0.0 }
 0x538   :  { %v3871_v48 = vpack.c.bf16 %v3867_v5, %v3867_v5  ;;  %v3873_v45 = vpack.c.bf16 %v3869_v27, %v3869_v27 }
 0x539   :  { %v3872_v14 = vpack.c.bf16 %v3868_v19, %v3868_v19  ;;  %v3874_v22 = vpack.c.bf16 %v3870_v6, %v3870_v6 }
 0x53b   :  { %4170 = vmatprep.mubr.bf16.mxu0 %v3872_v14 }
 0x53c   :  { %4171 = vmatmul.mubr.bf16.vlgmr.msra.gmra.mrb[64].mxu0 %v3871_v48 }
 0x53d   :  { %4901 = vmatpush3.bf16.msra.mxu0 %v5552_v11  ;;  %4210 = vmatprep.mubr.bf16.mxu0 %v3874_v22 }
 0x53e   :  { %4902 = vmatprep.subr.bf16.mxu0 %v5553_v52 }
 0x541   :  { %4903 = vmatpush3.bf16.msra.mxu0 %v5554_v54 }
 0x542   :  { %4904 = vmatprep.subr.bf16.mxu0 %v5555_v55 }
 0x545   :  { %4905 = vmatpush3.bf16.msra.mxu0 %v5556_v16 }
 0x546   :  { %4906 = vmatprep.subr.bf16.mxu0 %v5557_v21 }
 0x549   :  { %4907 = vmatpush3.bf16.msra.mxu0 %v5558_v40 }
 0x54a   :  { %4908 = vmatprep.subr.bf16.mxu0 %v5559_v9 }
 0x54d   :  { %4909 = vmatpush3.bf16.msra.mxu0 %v5560_v28 }
 0x54e   :  { %4910 = vmatprep.subr.bf16.mxu0 %v5561_v34 }
 0x551   :  { %4911 = vmatpush3.bf16.msra.mxu0 %v5562_v57 }
 0x552   :  { %4912 = vmatprep.subr.bf16.mxu0 %v5563_v50 }
 0x555   :  { %4913 = vmatpush3.bf16.msra.mxu0 %v5564_v26 }
 0x556   :  { %4914 = vmatprep.subr.bf16.mxu0 %v5565_v30 }
 0x559   :  { %4915 = vmatpush3.bf16.msra.mxu0 %v5566_v63 }
 0x55c   :  { %4211 = vmatmul.mubr.bf16.vlgmr.msra.gmra.mrb[68].mxu0 %v3873_v45 }
 0x60f   :  { %v4894_v32 = vpop.f32.mrb[64].mxu0 }
 0x610   :  { %v4895_v42 = vpop.f32.mrb[65].mxu0 }
 0x611   :  { %v4896_v13 = vadd.f32 %v4895_v42, %v4894_v32  ;;  %v4897_v31 = vpop.f32.mrb[66].mxu0 }
 0x612   :  { %v4898_v53 = vpop.f32.mrb[67].mxu0 }
 0x613   :  { %v4173_v33 = vadd.f32 %v4896_v13, %v4702_v51 }
 0x62f   :  { %v4916_v29 = vpop.f32.mrb[68].mxu0 }
 0x630   :  { %v4917_v56 = vpop.f32.mrb[69].mxu0 }
 0x631   :  { %v4918_v1 = vadd.f32 %v4917_v56, %v4916_v29  ;;  %v4919_v35 = vpop.f32.mrb[70].mxu0 }
 0x632   :  { %v4920_v44 = vpop.f32.mrb[71].mxu0 }
 0x633   :  { %v4213_v18 = vadd.f32 %v4918_v1, %v4173_v33 }
 0x635   :  { %4218 = vst [vmem:[#allocation5] sm:$0x3] %v4213_v18 }
 0x636   :  { %5578 = shalt.err (!%p5575_p4)
}
 0x637   :  { %s5579_s0 = scalar_lea.hbm %s7242_s11, 32 }
 0x638   :  { %p5580_p5 = scmp.ne.s32.totalorder %s7242_s11, %s5579_s0  ;;  %p5583_p6 = scmp.lt.u32.totalorder %s5579_s0, %s7242_s11 }
 0x63a   :  { %p5585_p7 = pnand %p5583_p6, %p5580_p5 }
 0x63c   :  { %5588 = shalt.err (!%p5585_p7)
}
 0x63d   :  { %4228 = dma.vmem_to_hbm [thread:$0]  %s4226_s3, 32, %s7242_s11, [#allocation6]  }
 0x63e   :  { %5589 = dma.done.wait [#allocation6], 32  }
 0x63f   :  { %5590 = vsyncadd [#allocation6], 4294967264 }
 0x640   :  { %4232 = vsyncpa [#allocation6], 1 }

</bundles_post_ra>
